<compile_context>
chip_gen: v5e
topology: v5e:2x2
jax: 0.10.0
libtpu: 0.0.40
codegen_flags: <defaults>
</compile_context>

<pallas_src>
import jax
import jax.numpy as jnp
from jax.experimental import pallas as pl
from jax.experimental.pallas import tpu as pltpu

# ---- model dimensions (toy scale, consistent with the module) ---------------
N_BATCH = 2
C_IN = 3
H_IN = W_IN = 16
C_STEM = 16                 # stem / MBConv channels
C_SE = 4                    # squeeze-excite bottleneck (ratio 0.25)
C_HEAD = 64                 # conv head channels
OUTPUT_SIZE = 32            # backbone _fc out_features
HIDDEN = 512                # custom `out` head hidden width
NUM_CLASSES = 10
HO = WO = H_IN // 2         # 8x8 after the stride-2 stem
CLS_PAD = 128               # lane-dense padded class axis for the softmax

LANES_STEM = WO * C_STEM    # 128: (x, c) lane axis of the C=16 slabs
LANES_HEAD = WO * C_HEAD    # 512
PATCH_K = 9 * WO * C_IN     # 216: im2col contraction dim
PATCH_K_PAD = 256           # zero-padded so K is an exact multiple of 128
ROWS = N_BATCH * HO         # 16 slab rows = (n, y)

_VMEM = pl.BlockSpec(memory_space=pltpu.MemorySpace.VMEM)


# ----------------------------------------------------------------------------
# Single fused kernel for the whole forward pass
# ----------------------------------------------------------------------------
def _fused_forward_kernel(
    patches_ref,  # (16, 256) bf16  lane-dense im2col patches (K padded)
    stem_w_ref,   # (256, 128) bf16 im2col stem weight (block-diag over x)
    stem_b_ref,   # (1, 128) f32
    dw_w_ref,     # (9, 128) f32    depthwise 3x3 weights, x-tiled
    dw_b_ref,     # (1, 128) f32
    se1_w_ref,    # (128, 128) bf16 GAP (1/64) folded in; cols >= C_SE are zero
    se1_b_ref,    # (1, 128) f32    entries >= C_SE are zero
    se2_w_ref,    # (128, 128) bf16 x-tiled over output lanes; rows >= C_SE zero
    se2_b_ref,    # (1, 128) f32    x-tiled
    proj_w_ref,   # (128, 128) bf16 1x1 project (block-diag over x)
    proj_b_ref,   # (1, 128) f32
    ch_w_ref,     # (128, 512) bf16 1x1 conv head (block-diag over x)
    ch_b_ref,     # (1, 512) f32
    fco1_w_ref,   # (512, 512) bf16 GAP folded _fc composed with out[0] Linear
    fco1_b_ref,   # (1, 512) f32
    o2_w_ref,     # (512, 128) bf16 class axis zero-padded to 128
    o2_b_ref,     # (1, 128) f32    pad classes biased to -1e30
    out_ref,      # (N, 128) f32    softmax over the padded class axis
):
    f32, bf16 = jnp.float32, jnp.bfloat16

    # ---- conv stem: 3x3 stride-2 (+folded BN, SiLU) as one aligned matmul ----
    h = jnp.dot(patches_ref[...], stem_w_ref[...],
                preferred_element_type=f32) + stem_b_ref[...]
    h = h * jax.nn.sigmoid(h)            # (16, 128) slab: rows=(n,y), lanes=(x,c)

    # ---- MBConv depthwise 3x3 (+folded BN, SiLU), register-resident ----------
    # x-shifts: lane rolls by +/-C_STEM + lane border masks (XLU slot).
    # y-shifts: sublane rolls of per-dy partial sums + row border masks.
    row = jax.lax.broadcasted_iota(jnp.int32, (ROWS, LANES_STEM), 0)
    lane = jax.lax.broadcasted_iota(jnp.int32, (ROWS, LANES_STEM), 1)
    y = row % HO
    wts = dw_w_ref[...]                  # (9, 128), tap k = (dy+1)*3 + (dx+1)

    hx = []                              # x-shifted, x-masked copies of h
    for dx in (-1, 0, 1):
        if dx == 0:
            hx.append(h)
        else:
            t = pltpu.roll(h, shift=(-dx * C_STEM) % LANES_STEM, axis=1)
            xm = (lane < LANES_STEM - C_STEM) if dx == 1 else (lane >= C_STEM)
            hx.append(jnp.where(xm, t, 0.0))

    part = []                            # per-dy partial sums over dx taps
    for dyi in range(3):                 # dyi = dy + 1
        acc = hx[0] * wts[dyi * 3 + 0:dyi * 3 + 1, :]
        acc = acc + hx[1] * wts[dyi * 3 + 1:dyi * 3 + 2, :]
        acc = acc + hx[2] * wts[dyi * 3 + 2:dyi * 3 + 3, :]
        part.append(acc)

    dw = part[1]                                             # dy = 0
    t_up = pltpu.roll(part[0], shift=1, axis=0)              # dy = -1
    dw = dw + jnp.where(y >= 1, t_up, 0.0)
    t_dn = pltpu.roll(part[2], shift=ROWS - 1, axis=0)       # dy = +1
    dw = dw + jnp.where(y < HO - 1, t_dn, 0.0)
    dw = dw + dw_b_ref[...]
    dw = dw * jax.nn.sigmoid(dw)                             # (16, 128)

    # ---- squeeze-and-excite (GAP folded into se1; x-tiling folded into se2) --
    dw3 = dw.reshape(N_BATCH, HO, LANES_STEM)
    dw_sum_y = jnp.sum(dw3, axis=1)                          # (N, 128)
    se = jnp.dot(dw_sum_y.astype(bf16), se1_w_ref[...],
                 preferred_element_type=f32) + se1_b_ref[...]
    se = se * jax.nn.sigmoid(se)                             # (N, 128); pad lanes stay 0
    gate = jax.nn.sigmoid(
        jnp.dot(se.astype(bf16), se2_w_ref[...],
                preferred_element_type=f32) + se2_b_ref[...])  # (N, 128) lanes=(x,c)
    gated = (dw3 * gate[:, None, :]).reshape(ROWS, LANES_STEM)

    # ---- 1x1 project (+folded BN) with the residual skip fused in ------------
    mb = jnp.dot(gated.astype(bf16), proj_w_ref[...],
                 preferred_element_type=f32) + proj_b_ref[...] + h      # (16, 128)

    # ---- conv head 1x1 (+folded BN, SiLU); GAP folded into the composed fc ---
    ch = jnp.dot(mb.astype(bf16), ch_w_ref[...],
                 preferred_element_type=f32) + ch_b_ref[...]
    ch = ch * jax.nn.sigmoid(ch)                                        # (16, 512)
    ch_sum_y = jnp.sum(ch.reshape(N_BATCH, HO, LANES_HEAD), axis=1)     # (N, 512)

    # ---- composed backbone _fc ∘ out[0] Linear, then ReLU ---------------------
    # (dropout is identity at inference; no nonlinearity between _fc and out[0])
    z = jnp.dot(ch_sum_y.astype(bf16), fco1_w_ref[...],
                preferred_element_type=f32) + fco1_b_ref[...]
    z = jnp.maximum(z, 0.0)                                             # (N, 512)

    # ---- out[2] Linear -> Softmax(dim=1) over the padded class axis ----------
    logits = jnp.dot(z.astype(bf16), o2_w_ref[...],
                     preferred_element_type=f32) + o2_b_ref[...]        # (N, 128)
    m = jnp.max(logits, axis=-1, keepdims=True)
    e = jnp.exp(logits - m)                       # pad lanes: exp(-1e30 - m) == 0
    out_ref[...] = (e / jnp.sum(e, axis=-1, keepdims=True)).astype(out_ref.dtype)


# ----------------------------------------------------------------------------
# Forward wrapper
# ----------------------------------------------------------------------------
@jax.jit
def custom_efficientnet_forward(x_nchw, kp):
    """x_nchw: (N, 3, 16, 16) float32; kp: packed kernel params (pack_params)."""
    # NCHW -> NHWC, TF-SAME pad for the stride-2 3x3 stem, then lane-dense
    # im2col entirely in the wrapper (one fused XLA pad/slice/concat/cast):
    # patches[(n,y), k*WO*C_IN + x*C_IN + c] = xp[n, 2y+ki, 2x+kj, c], k=ki*3+kj,
    # zero-padded along K to 256 and pre-cast to bf16.
    x = jnp.transpose(x_nchw, (0, 2, 3, 1)).astype(jnp.float32)      # (N, 16, 16, 3)
    xp = jnp.pad(x, ((0, 0), (0, 1), (0, 1), (0, 0)))                # (N, 17, 17, 3)
    taps = []
    for ki in range(3):
        for kj in range(3):
            t = xp[:, ki:ki + 2 * HO - 1:2, kj:kj + 2 * WO - 1:2, :]  # (N, 8, 8, 3)
            taps.append(t.reshape(N_BATCH, HO, WO * C_IN))
    patches = jnp.concatenate(taps, axis=-1).reshape(ROWS, PATCH_K)   # (16, 216)
    patches = jnp.pad(patches, ((0, 0), (0, PATCH_K_PAD - PATCH_K)))
    patches = patches.astype(jnp.bfloat16)                            # (16, 256)

    args = (patches,
            kp["stem_w"], kp["stem_b"], kp["dw_w"], kp["dw_b"],
            kp["se1_w"], kp["se1_b"], kp["se2_w"], kp["se2_b"],
            kp["proj_w"], kp["proj_b"], kp["ch_w"], kp["ch_b"],
            kp["fco1_w"], kp["fco1_b"], kp["o2_w"], kp["o2_b"])

    out_padded = pl.pallas_call(
        _fused_forward_kernel,
        out_shape=jax.ShapeDtypeStruct((N_BATCH, CLS_PAD), jnp.float32),
        in_specs=[_VMEM] * len(args),
        out_specs=_VMEM,
    )(*args)
    return out_padded[:, :NUM_CLASSES]


# ----------------------------------------------------------------------------
# Deterministic synthetic parameters (BatchNorm folded into conv weights/bias)
# ----------------------------------------------------------------------------
def _bn_fold(kg, kb, km, kv, c, eps=1e-3):
    gamma = 1.0 + 0.1 * jax.random.normal(kg, (c,), jnp.float32)
    beta = 0.1 * jax.random.normal(kb, (c,), jnp.float32)
    mean = 0.1 * jax.random.normal(km, (c,), jnp.float32)
    var = 1.0 + 0.1 * jnp.abs(jax.random.normal(kv, (c,), jnp.float32))
    scale = gamma / jnp.sqrt(var + eps)
    return scale, beta - mean * scale


def init_params(key):
    """Synthetic BN-folded parameters in their 'natural' (PyTorch-like) shapes."""
    ks = iter(jax.random.split(key, 32))
    dense = lambda kk, shape, s=0.1: s * jax.random.normal(kk, shape, jnp.float32)
    p = {}
    w = dense(next(ks), (9 * C_IN, C_STEM))                     # conv stem + BN0
    s, b = _bn_fold(next(ks), next(ks), next(ks), next(ks), C_STEM)
    p["stem_w"], p["stem_b"] = w * s[None, :], b
    w = dense(next(ks), (9, C_STEM))                            # depthwise + BN
    s, b = _bn_fold(next(ks), next(ks), next(ks), next(ks), C_STEM)
    p["dw_w"], p["dw_b"] = w * s[None, :], b
    p["se1_w"], p["se1_b"] = dense(next(ks), (C_STEM, C_SE)), dense(next(ks), (C_SE,))
    p["se2_w"], p["se2_b"] = dense(next(ks), (C_SE, C_STEM)), dense(next(ks), (C_STEM,))
    w = dense(next(ks), (C_STEM, C_STEM))                       # project 1x1 + BN
    s, b = _bn_fold(next(ks), next(ks), next(ks), next(ks), C_STEM)
    p["proj_w"], p["proj_b"] = w * s[None, :], b
    w = dense(next(ks), (C_STEM, C_HEAD))                       # conv head 1x1 + BN1
    s, b = _bn_fold(next(ks), next(ks), next(ks), next(ks), C_HEAD)
    p["chead_w"], p["chead_b"] = w * s[None, :], b
    p["fc_w"], p["fc_b"] = dense(next(ks), (C_HEAD, OUTPUT_SIZE)), dense(next(ks), (OUTPUT_SIZE,))
    p["out1_w"], p["out1_b"] = dense(next(ks), (OUTPUT_SIZE, HIDDEN)), dense(next(ks), (HIDDEN,))
    p["out2_w"], p["out2_b"] = dense(next(ks), (HIDDEN, NUM_CLASSES)), dense(next(ks), (NUM_CLASSES,))
    return p


def pack_params(p):
    """One-time repack into the lane-dense layouts the fused kernel consumes:
    block-diagonal kron(I_8, W) 1x1 convs over the (x, c) lane axis, both GAPs
    folded into the next matmul, x-tiled depthwise + SE-gate weights, the
    backbone _fc composed with the first out-head Linear, contraction dim of
    the stem padded 216->256, class axis padded to 128 lanes, MXU operands bf16."""
    f32, bf16 = jnp.float32, jnp.bfloat16
    eye_x = jnp.eye(WO, dtype=f32)
    ones_x = jnp.ones((WO, 1), f32)
    tile_x = lambda v: jnp.tile(v, WO).reshape(1, -1).astype(f32)

    sw = p["stem_w"].reshape(9, C_IN, C_STEM)                   # tap-major rows
    stem_w = jnp.concatenate([jnp.kron(eye_x, sw[k]) for k in range(9)], axis=0)
    stem_w = jnp.pad(stem_w, ((0, PATCH_K_PAD - PATCH_K), (0, 0)))      # (256, 128)

    se1_w = jnp.kron(ones_x, p["se1_w"]) / (HO * WO)                    # (128, 4)
    se1_w = jnp.pad(se1_w, ((0, 0), (0, LANES_STEM - C_SE)))            # (128, 128)
    se1_b = jnp.pad(p["se1_b"], (0, LANES_STEM - C_SE)).reshape(1, -1)

    se2_w = jnp.tile(p["se2_w"], (1, WO))                               # (4, 128) x-tiled
    se2_w = jnp.pad(se2_w, ((0, LANES_STEM - C_SE), (0, 0)))            # (128, 128)

    fc_fold = jnp.kron(ones_x, p["fc_w"]) / (HO * WO)                   # (512, 32), GAP folded
    fco1_w = fc_fold @ p["out1_w"]                                      # (512, 512)
    fco1_b = p["fc_b"] @ p["out1_w"] + p["out1_b"]                      # (512,)

    return {
        "stem_w": stem_w.astype(bf16),                                  # (256, 128)
        "stem_b": tile_x(p["stem_b"]),                                  # (1, 128)
        "dw_w": jnp.tile(p["dw_w"], (1, WO)).astype(f32),               # (9, 128)
        "dw_b": tile_x(p["dw_b"]),                                      # (1, 128)
        "se1_w": se1_w.astype(bf16),                                    # (128, 128)
        "se1_b": se1_b.astype(f32),                                     # (1, 128)
        "se2_w": se2_w.astype(bf16),                                    # (128, 128)
        "se2_b": tile_x(p["se2_b"]),                                    # (1, 128)
        "proj_w": jnp.kron(eye_x, p["proj_w"]).astype(bf16),            # (128, 128)
        "proj_b": tile_x(p["proj_b"]),
        "ch_w": jnp.kron(eye_x, p["chead_w"]).astype(bf16),             # (128, 512)
        "ch_b": tile_x(p["chead_b"]),
        "fco1_w": fco1_w.astype(bf16),                                  # (512, 512)
        "fco1_b": fco1_b.reshape(1, -1).astype(f32),                    # (1, 512)
        "o2_w": jnp.concatenate(
            [p["out2_w"], jnp.zeros((HIDDEN, CLS_PAD - NUM_CLASSES), f32)],
            axis=1).astype(bf16),                                       # (512, 128)
        "o2_b": jnp.concatenate(
            [p["out2_b"], jnp.full((CLS_PAD - NUM_CLASSES,), -1e30, f32)]
        ).reshape(1, -1).astype(f32),                                   # (1, 128)
    }


if __name__ == "__main__":
    key = jax.random.PRNGKey(0)
    k_x, k_p = jax.random.split(key)
    x = jax.random.uniform(k_x, (N_BATCH, C_IN, H_IN, W_IN), jnp.float32)  # NCHW like PyTorch
    kparams = pack_params(init_params(k_p))

    out = custom_efficientnet_forward(x, kparams)
    out = jax.block_until_ready(out)

    assert out.shape == (N_BATCH, NUM_CLASSES)
    assert bool(jnp.all(jnp.isfinite(out)))
    assert bool(jnp.all(out >= 0.0))
    # Exact-divide softmax: rows sum to 1 to f32 precision.
    assert bool(jnp.allclose(jnp.sum(out, axis=1), 1.0, atol=1e-4))
    print("KERNEL_OK")
</pallas_src>

<mosaic_0001>
module attributes {stable_mosaic.version = 11 : i64} {
  func.func @_fused_forward_kernel(%arg0: memref<16x256xbf16, #tpu.memory_space<vmem>>, %arg1: memref<256x128xbf16, #tpu.memory_space<vmem>>, %arg2: memref<1x128xf32, #tpu.memory_space<vmem>>, %arg3: memref<9x128xf32, #tpu.memory_space<vmem>>, %arg4: memref<1x128xf32, #tpu.memory_space<vmem>>, %arg5: memref<128x128xbf16, #tpu.memory_space<vmem>>, %arg6: memref<1x128xf32, #tpu.memory_space<vmem>>, %arg7: memref<128x128xbf16, #tpu.memory_space<vmem>>, %arg8: memref<1x128xf32, #tpu.memory_space<vmem>>, %arg9: memref<128x128xbf16, #tpu.memory_space<vmem>>, %arg10: memref<1x128xf32, #tpu.memory_space<vmem>>, %arg11: memref<128x512xbf16, #tpu.memory_space<vmem>>, %arg12: memref<1x512xf32, #tpu.memory_space<vmem>>, %arg13: memref<512x512xbf16, #tpu.memory_space<vmem>>, %arg14: memref<1x512xf32, #tpu.memory_space<vmem>>, %arg15: memref<512x128xbf16, #tpu.memory_space<vmem>>, %arg16: memref<1x128xf32, #tpu.memory_space<vmem>>, %arg17: memref<2x128xf32, #tpu.memory_space<vmem>>) attributes {dimension_semantics = [], scalar_prefetch = 0 : i64, scratch_operands = 0 : i64, tpu.core_type = #tpu.core_type<tc>} {
    %c0 = arith.constant 0 : index
    %c0_0 = arith.constant 0 : index
    %0 = vector.load %arg0[%c0, %c0_0] : memref<16x256xbf16, #tpu.memory_space<vmem>>, vector<16x256xbf16>
    %c0_1 = arith.constant 0 : index
    %c0_2 = arith.constant 0 : index
    %1 = vector.load %arg1[%c0_1, %c0_2] : memref<256x128xbf16, #tpu.memory_space<vmem>>, vector<256x128xbf16>
    %cst = arith.constant dense<0.000000e+00> : vector<16x128xf32>
    %2 = tpu.matmul %0, %1, %cst {dimension_numbers = #tpu.dot_dimension_numbers<[1], [0], [0], [1], [0, 0, 1, 1], [], []>} : vector<16x256xbf16>, vector<256x128xbf16>, vector<16x128xf32> -> vector<16x128xf32>
    %c0_3 = arith.constant 0 : index
    %c0_4 = arith.constant 0 : index
    %3 = vector.load %arg2[%c0_3, %c0_4] : memref<1x128xf32, #tpu.memory_space<vmem>>, vector<1x128xf32>
    %4 = vector.broadcast %3 : vector<1x128xf32> to vector<16x128xf32>
    %5 = arith.addf %2, %4 : vector<16x128xf32>
    %6 = arith.negf %5 : vector<16x128xf32>
    %7 = math.exp %6 : vector<16x128xf32>
    %cst_5 = arith.constant 1.000000e+00 : f32
    %8 = vector.broadcast %cst_5 : f32 to vector<16x128xf32>
    %9 = arith.addf %8, %7 : vector<16x128xf32>
    %10 = arith.divf %8, %9 : vector<16x128xf32>
    %11 = arith.mulf %5, %10 : vector<16x128xf32>
    %12 = tpu.iota {dimensions = array<i32: 0>} : vector<16x128xi32>
    %13 = tpu.iota {dimensions = array<i32: 1>} : vector<16x128xi32>
    %c8_i32 = arith.constant 8 : i32
    %c0_i32 = arith.constant 0 : i32
    %14 = arith.cmpi eq, %c8_i32, %c0_i32 : i32
    %c1_i32 = arith.constant 1 : i32
    %15 = arith.select %14, %c1_i32, %c8_i32 : i32
    %16 = vector.broadcast %15 : i32 to vector<16x128xi32>
    %17 = arith.remsi %12, %16 : vector<16x128xi32>
    %c0_i32_6 = arith.constant 0 : i32
    %18 = vector.broadcast %c0_i32_6 : i32 to vector<16x128xi32>
    %19 = arith.cmpi ne, %17, %18 : vector<16x128xi32>
    %c0_i32_7 = arith.constant 0 : i32
    %20 = vector.broadcast %c0_i32_7 : i32 to vector<16x128xi32>
    %21 = arith.cmpi slt, %17, %20 : vector<16x128xi32>
    %c0_i32_8 = arith.constant 0 : i32
    %22 = arith.cmpi slt, %15, %c0_i32_8 : i32
    %23 = vector.broadcast %22 : i1 to vector<16x128xi1>
    %24 = vector.broadcast %23 : vector<16x128xi1> to vector<16x128xi1>
    %25 = arith.xori %21, %24 : vector<16x128xi1>
    %26 = arith.andi %25, %19 : vector<16x128xi1>
    %27 = vector.broadcast %15 : i32 to vector<16x128xi32>
    %28 = arith.addi %17, %27 : vector<16x128xi32>
    %29 = arith.select %26, %28, %17 : vector<16x128xi1>, vector<16x128xi32>
    %c0_9 = arith.constant 0 : index
    %c0_10 = arith.constant 0 : index
    %30 = vector.load %arg3[%c0_9, %c0_10] : memref<9x128xf32, #tpu.memory_space<vmem>>, vector<9x128xf32>
    %c16_i32 = arith.constant 16 : i32
    %31 = tpu.dynamic_rotate %11 by %c16_i32 dim 1 : vector<16x128xf32>, i32 -> vector<16x128xf32>
    %c16_i32_11 = arith.constant 16 : i32
    %32 = vector.broadcast %c16_i32_11 : i32 to vector<16x128xi32>
    %33 = arith.cmpi sge, %13, %32 : vector<16x128xi32>
    %cst_12 = arith.constant 0.000000e+00 : f32
    %34 = vector.broadcast %cst_12 : f32 to vector<16x128xf32>
    %35 = arith.select %33, %31, %34 : vector<16x128xi1>, vector<16x128xf32>
    %c112_i32 = arith.constant 112 : i32
    %36 = tpu.dynamic_rotate %11 by %c112_i32 dim 1 : vector<16x128xf32>, i32 -> vector<16x128xf32>
    %c112_i32_13 = arith.constant 112 : i32
    %37 = vector.broadcast %c112_i32_13 : i32 to vector<16x128xi32>
    %38 = arith.cmpi slt, %13, %37 : vector<16x128xi32>
    %cst_14 = arith.constant 0.000000e+00 : f32
    %39 = vector.broadcast %cst_14 : f32 to vector<16x128xf32>
    %40 = arith.select %38, %36, %39 : vector<16x128xi1>, vector<16x128xf32>
    %41 = vector.extract_strided_slice %30 {offsets = [0, 0], sizes = [1, 128], strides = [1, 1]} : vector<9x128xf32> to vector<1x128xf32>
    %42 = vector.broadcast %41 : vector<1x128xf32> to vector<16x128xf32>
    %43 = arith.mulf %35, %42 : vector<16x128xf32>
    %44 = vector.extract_strided_slice %30 {offsets = [1, 0], sizes = [1, 128], strides = [1, 1]} : vector<9x128xf32> to vector<1x128xf32>
    %45 = vector.broadcast %44 : vector<1x128xf32> to vector<16x128xf32>
    %46 = arith.mulf %11, %45 : vector<16x128xf32>
    %47 = arith.addf %43, %46 : vector<16x128xf32>
    %48 = vector.extract_strided_slice %30 {offsets = [2, 0], sizes = [1, 128], strides = [1, 1]} : vector<9x128xf32> to vector<1x128xf32>
    %49 = vector.broadcast %48 : vector<1x128xf32> to vector<16x128xf32>
    %50 = arith.mulf %40, %49 : vector<16x128xf32>
    %51 = arith.addf %47, %50 : vector<16x128xf32>
    %52 = vector.extract_strided_slice %30 {offsets = [3, 0], sizes = [1, 128], strides = [1, 1]} : vector<9x128xf32> to vector<1x128xf32>
    %53 = vector.broadcast %52 : vector<1x128xf32> to vector<16x128xf32>
    %54 = arith.mulf %35, %53 : vector<16x128xf32>
    %55 = vector.extract_strided_slice %30 {offsets = [4, 0], sizes = [1, 128], strides = [1, 1]} : vector<9x128xf32> to vector<1x128xf32>
    %56 = vector.broadcast %55 : vector<1x128xf32> to vector<16x128xf32>
    %57 = arith.mulf %11, %56 : vector<16x128xf32>
    %58 = arith.addf %54, %57 : vector<16x128xf32>
    %59 = vector.extract_strided_slice %30 {offsets = [5, 0], sizes = [1, 128], strides = [1, 1]} : vector<9x128xf32> to vector<1x128xf32>
    %60 = vector.broadcast %59 : vector<1x128xf32> to vector<16x128xf32>
    %61 = arith.mulf %40, %60 : vector<16x128xf32>
    %62 = arith.addf %58, %61 : vector<16x128xf32>
    %63 = vector.extract_strided_slice %30 {offsets = [6, 0], sizes = [1, 128], strides = [1, 1]} : vector<9x128xf32> to vector<1x128xf32>
    %64 = vector.broadcast %63 : vector<1x128xf32> to vector<16x128xf32>
    %65 = arith.mulf %35, %64 : vector<16x128xf32>
    %66 = vector.extract_strided_slice %30 {offsets = [7, 0], sizes = [1, 128], strides = [1, 1]} : vector<9x128xf32> to vector<1x128xf32>
    %67 = vector.broadcast %66 : vector<1x128xf32> to vector<16x128xf32>
    %68 = arith.mulf %11, %67 : vector<16x128xf32>
    %69 = arith.addf %65, %68 : vector<16x128xf32>
    %70 = vector.extract_strided_slice %30 {offsets = [8, 0], sizes = [1, 128], strides = [1, 1]} : vector<9x128xf32> to vector<1x128xf32>
    %71 = vector.broadcast %70 : vector<1x128xf32> to vector<16x128xf32>
    %72 = arith.mulf %40, %71 : vector<16x128xf32>
    %73 = arith.addf %69, %72 : vector<16x128xf32>
    %c1_i32_15 = arith.constant 1 : i32
    %74 = tpu.dynamic_rotate %51 by %c1_i32_15 dim 0 : vector<16x128xf32>, i32 -> vector<16x128xf32>
    %c1_i32_16 = arith.constant 1 : i32
    %75 = vector.broadcast %c1_i32_16 : i32 to vector<16x128xi32>
    %76 = arith.cmpi sge, %29, %75 : vector<16x128xi32>
    %cst_17 = arith.constant 0.000000e+00 : f32
    %77 = vector.broadcast %cst_17 : f32 to vector<16x128xf32>
    %78 = arith.select %76, %74, %77 : vector<16x128xi1>, vector<16x128xf32>
    %79 = arith.addf %62, %78 : vector<16x128xf32>
    %c15_i32 = arith.constant 15 : i32
    %80 = tpu.dynamic_rotate %73 by %c15_i32 dim 0 : vector<16x128xf32>, i32 -> vector<16x128xf32>
    %c7_i32 = arith.constant 7 : i32
    %81 = vector.broadcast %c7_i32 : i32 to vector<16x128xi32>
    %82 = arith.cmpi slt, %29, %81 : vector<16x128xi32>
    %cst_18 = arith.constant 0.000000e+00 : f32
    %83 = vector.broadcast %cst_18 : f32 to vector<16x128xf32>
    %84 = arith.select %82, %80, %83 : vector<16x128xi1>, vector<16x128xf32>
    %85 = arith.addf %79, %84 : vector<16x128xf32>
    %c0_19 = arith.constant 0 : index
    %c0_20 = arith.constant 0 : index
    %86 = vector.load %arg4[%c0_19, %c0_20] : memref<1x128xf32, #tpu.memory_space<vmem>>, vector<1x128xf32>
    %87 = vector.broadcast %86 : vector<1x128xf32> to vector<16x128xf32>
    %88 = arith.addf %85, %87 : vector<16x128xf32>
    %89 = arith.negf %88 : vector<16x128xf32>
    %90 = math.exp %89 : vector<16x128xf32>
    %cst_21 = arith.constant 1.000000e+00 : f32
    %91 = vector.broadcast %cst_21 : f32 to vector<16x128xf32>
    %92 = arith.addf %91, %90 : vector<16x128xf32>
    %93 = arith.divf %91, %92 : vector<16x128xf32>
    %94 = arith.mulf %88, %93 : vector<16x128xf32>
    %95 = vector.shape_cast %94 : vector<16x128xf32> to vector<2x8x128xf32>
    %cst_22 = arith.constant dense<0.000000e+00> : vector<2x128xf32>
    %96 = vector.multi_reduction <add>, %95, %cst_22 [1] : vector<2x8x128xf32> to vector<2x128xf32>
    %97 = arith.truncf %96 : vector<2x128xf32> to vector<2x128xbf16>
    %c0_23 = arith.constant 0 : index
    %c0_24 = arith.constant 0 : index
    %98 = vector.load %arg5[%c0_23, %c0_24] : memref<128x128xbf16, #tpu.memory_space<vmem>>, vector<128x128xbf16>
    %cst_25 = arith.constant dense<0.000000e+00> : vector<2x128xf32>
    %99 = tpu.matmul %97, %98, %cst_25 {dimension_numbers = #tpu.dot_dimension_numbers<[1], [0], [0], [1], [0, 0, 1, 1], [], []>} : vector<2x128xbf16>, vector<128x128xbf16>, vector<2x128xf32> -> vector<2x128xf32>
    %c0_26 = arith.constant 0 : index
    %c0_27 = arith.constant 0 : index
    %100 = vector.load %arg6[%c0_26, %c0_27] : memref<1x128xf32, #tpu.memory_space<vmem>>, vector<1x128xf32>
    %101 = vector.broadcast %100 : vector<1x128xf32> to vector<2x128xf32>
    %102 = arith.addf %99, %101 : vector<2x128xf32>
    %103 = arith.negf %102 : vector<2x128xf32>
    %104 = math.exp %103 : vector<2x128xf32>
    %cst_28 = arith.constant 1.000000e+00 : f32
    %105 = vector.broadcast %cst_28 : f32 to vector<2x128xf32>
    %106 = arith.addf %105, %104 : vector<2x128xf32>
    %107 = arith.divf %105, %106 : vector<2x128xf32>
    %108 = arith.mulf %102, %107 : vector<2x128xf32>
    %109 = arith.truncf %108 : vector<2x128xf32> to vector<2x128xbf16>
    %c0_29 = arith.constant 0 : index
    %c0_30 = arith.constant 0 : index
    %110 = vector.load %arg7[%c0_29, %c0_30] : memref<128x128xbf16, #tpu.memory_space<vmem>>, vector<128x128xbf16>
    %cst_31 = arith.constant dense<0.000000e+00> : vector<2x128xf32>
    %111 = tpu.matmul %109, %110, %cst_31 {dimension_numbers = #tpu.dot_dimension_numbers<[1], [0], [0], [1], [0, 0, 1, 1], [], []>} : vector<2x128xbf16>, vector<128x128xbf16>, vector<2x128xf32> -> vector<2x128xf32>
    %c0_32 = arith.constant 0 : index
    %c0_33 = arith.constant 0 : index
    %112 = vector.load %arg8[%c0_32, %c0_33] : memref<1x128xf32, #tpu.memory_space<vmem>>, vector<1x128xf32>
    %113 = vector.broadcast %112 : vector<1x128xf32> to vector<2x128xf32>
    %114 = arith.addf %111, %113 : vector<2x128xf32>
    %115 = arith.negf %114 : vector<2x128xf32>
    %116 = math.exp %115 : vector<2x128xf32>
    %cst_34 = arith.constant 1.000000e+00 : f32
    %117 = vector.broadcast %cst_34 : f32 to vector<2x128xf32>
    %118 = arith.addf %117, %116 : vector<2x128xf32>
    %119 = arith.divf %117, %118 : vector<2x128xf32>
    %120 = vector.shape_cast %119 : vector<2x128xf32> to vector<2x1x128xf32>
    %121 = vector.broadcast %120 : vector<2x1x128xf32> to vector<2x8x128xf32>
    %122 = arith.mulf %95, %121 : vector<2x8x128xf32>
    %123 = vector.shape_cast %122 : vector<2x8x128xf32> to vector<16x128xf32>
    %124 = arith.truncf %123 : vector<16x128xf32> to vector<16x128xbf16>
    %c0_35 = arith.constant 0 : index
    %c0_36 = arith.constant 0 : index
    %125 = vector.load %arg9[%c0_35, %c0_36] : memref<128x128xbf16, #tpu.memory_space<vmem>>, vector<128x128xbf16>
    %cst_37 = arith.constant dense<0.000000e+00> : vector<16x128xf32>
    %126 = tpu.matmul %124, %125, %cst_37 {dimension_numbers = #tpu.dot_dimension_numbers<[1], [0], [0], [1], [0, 0, 1, 1], [], []>} : vector<16x128xbf16>, vector<128x128xbf16>, vector<16x128xf32> -> vector<16x128xf32>
    %c0_38 = arith.constant 0 : index
    %c0_39 = arith.constant 0 : index
    %127 = vector.load %arg10[%c0_38, %c0_39] : memref<1x128xf32, #tpu.memory_space<vmem>>, vector<1x128xf32>
    %128 = vector.broadcast %127 : vector<1x128xf32> to vector<16x128xf32>
    %129 = arith.addf %126, %128 : vector<16x128xf32>
    %130 = arith.addf %129, %11 : vector<16x128xf32>
    %131 = arith.truncf %130 : vector<16x128xf32> to vector<16x128xbf16>
    %c0_40 = arith.constant 0 : index
    %c0_41 = arith.constant 0 : index
    %132 = vector.load %arg11[%c0_40, %c0_41] : memref<128x512xbf16, #tpu.memory_space<vmem>>, vector<128x512xbf16>
    %cst_42 = arith.constant dense<0.000000e+00> : vector<16x512xf32>
    %133 = tpu.matmul %131, %132, %cst_42 {dimension_numbers = #tpu.dot_dimension_numbers<[1], [0], [0], [1], [0, 0, 1, 1], [], []>} : vector<16x128xbf16>, vector<128x512xbf16>, vector<16x512xf32> -> vector<16x512xf32>
    %c0_43 = arith.constant 0 : index
    %c0_44 = arith.constant 0 : index
    %134 = vector.load %arg12[%c0_43, %c0_44] : memref<1x512xf32, #tpu.memory_space<vmem>>, vector<1x512xf32>
    %135 = vector.broadcast %134 : vector<1x512xf32> to vector<16x512xf32>
    %136 = arith.addf %133, %135 : vector<16x512xf32>
    %137 = arith.negf %136 : vector<16x512xf32>
    %138 = math.exp %137 : vector<16x512xf32>
    %cst_45 = arith.constant 1.000000e+00 : f32
    %139 = vector.broadcast %cst_45 : f32 to vector<16x512xf32>
    %140 = arith.addf %139, %138 : vector<16x512xf32>
    %141 = arith.divf %139, %140 : vector<16x512xf32>
    %142 = arith.mulf %136, %141 : vector<16x512xf32>
    %143 = vector.shape_cast %142 : vector<16x512xf32> to vector<2x8x512xf32>
    %cst_46 = arith.constant dense<0.000000e+00> : vector<2x512xf32>
    %144 = vector.multi_reduction <add>, %143, %cst_46 [1] : vector<2x8x512xf32> to vector<2x512xf32>
    %145 = arith.truncf %144 : vector<2x512xf32> to vector<2x512xbf16>
    %c0_47 = arith.constant 0 : index
    %c0_48 = arith.constant 0 : index
    %146 = vector.load %arg13[%c0_47, %c0_48] : memref<512x512xbf16, #tpu.memory_space<vmem>>, vector<512x512xbf16>
    %cst_49 = arith.constant dense<0.000000e+00> : vector<2x512xf32>
    %147 = tpu.matmul %145, %146, %cst_49 {dimension_numbers = #tpu.dot_dimension_numbers<[1], [0], [0], [1], [0, 0, 1, 1], [], []>} : vector<2x512xbf16>, vector<512x512xbf16>, vector<2x512xf32> -> vector<2x512xf32>
    %c0_50 = arith.constant 0 : index
    %c0_51 = arith.constant 0 : index
    %148 = vector.load %arg14[%c0_50, %c0_51] : memref<1x512xf32, #tpu.memory_space<vmem>>, vector<1x512xf32>
    %149 = vector.broadcast %148 : vector<1x512xf32> to vector<2x512xf32>
    %150 = arith.addf %147, %149 : vector<2x512xf32>
    %cst_52 = arith.constant 0.000000e+00 : f32
    %151 = vector.broadcast %cst_52 : f32 to vector<2x512xf32>
    %152 = arith.maximumf %150, %151 : vector<2x512xf32>
    %153 = arith.truncf %152 : vector<2x512xf32> to vector<2x512xbf16>
    %c0_53 = arith.constant 0 : index
    %c0_54 = arith.constant 0 : index
    %154 = vector.load %arg15[%c0_53, %c0_54] : memref<512x128xbf16, #tpu.memory_space<vmem>>, vector<512x128xbf16>
    %cst_55 = arith.constant dense<0.000000e+00> : vector<2x128xf32>
    %155 = tpu.matmul %153, %154, %cst_55 {dimension_numbers = #tpu.dot_dimension_numbers<[1], [0], [0], [1], [0, 0, 1, 1], [], []>} : vector<2x512xbf16>, vector<512x128xbf16>, vector<2x128xf32> -> vector<2x128xf32>
    %c0_56 = arith.constant 0 : index
    %c0_57 = arith.constant 0 : index
    %156 = vector.load %arg16[%c0_56, %c0_57] : memref<1x128xf32, #tpu.memory_space<vmem>>, vector<1x128xf32>
    %157 = vector.broadcast %156 : vector<1x128xf32> to vector<2x128xf32>
    %158 = arith.addf %155, %157 : vector<2x128xf32>
    %cst_58 = arith.constant dense<0xFF800000> : vector<2xf32>
    %159 = vector.multi_reduction <maximumf>, %158, %cst_58 [1] : vector<2x128xf32> to vector<2xf32>
    %160 = vector.shape_cast %159 : vector<2xf32> to vector<2x1xf32>
    %161 = vector.broadcast %160 : vector<2x1xf32> to vector<2x128xf32>
    %162 = arith.subf %158, %161 : vector<2x128xf32>
    %163 = math.exp %162 : vector<2x128xf32>
    %cst_59 = arith.constant dense<0.000000e+00> : vector<2xf32>
    %164 = vector.multi_reduction <add>, %163, %cst_59 [1] : vector<2x128xf32> to vector<2xf32>
    %165 = vector.shape_cast %164 : vector<2xf32> to vector<2x1xf32>
    %166 = vector.broadcast %165 : vector<2x1xf32> to vector<2x128xf32>
    %167 = arith.divf %163, %166 : vector<2x128xf32>
    %c0_60 = arith.constant 0 : index
    %c0_61 = arith.constant 0 : index
    %168 = vector.load %arg17[%c0_60, %c0_61] : memref<2x128xf32, #tpu.memory_space<vmem>>, vector<2x128xf32>
    tpu.vector_store %arg17[%c0_60, %c0_61], %167 {strides = array<i32>} : memref<2x128xf32, #tpu.memory_space<vmem>>, vector<2x128xf32>,
    return
  }
}

</mosaic_0001>

<bundles_post_ra>
// kernel: custom_efficientnet_forward.1
= control target key start
LH: loop header
LB: loop body
LE: loop exit
PB: predicated region body
PF: predicated region fallthrough
CT: control target
= control target key end

     0   :  { %s5555_s0 = inlined_call_operand.vmem [shape: bf16[16,256], index: 0, kind: input, shape index: {}]   ;;  %s5556_s1 = inlined_call_operand.hbm [shape: bf16[256,128], index: 1, kind: input, shape index: {}]   ;;  %s5557_s2 = inlined_call_operand.vmem [shape: f32[1,128], index: 2, kind: input, shape index: {}]   ;;  %s5558_s3 = inlined_call_operand.vmem [shape: f32[9,128], index: 3, kind: input, shape index: {}]   ;;  %s5559_s4 = inlined_call_operand.vmem [shape: f32[1,128], index: 4, kind: input, shape index: {}]   ;;  %s5560_s5 = inlined_call_operand.vmem [shape: bf16[128,128], index: 5, kind: input, shape index: {}]   ;;  %s5561_s6 = inlined_call_operand.vmem [shape: f32[1,128], index: 6, kind: input, shape index: {}]   ;;  %s5562_s7 = inlined_call_operand.hbm [shape: bf16[128,128], index: 7, kind: input, shape index: {}]   ;;  %s5563_s8 = inlined_call_operand.vmem [shape: f32[1,128], index: 8, kind: input, shape index: {}]   ;;  %s5564_s9 = inlined_call_operand.hbm [shape: bf16[128,128], index: 9, kind: input, shape index: {}]   ;;  %s5565_s10 = inlined_call_operand.vmem [shape: f32[1,128], index: 10, kind: input, shape index: {}]   ;;  %s5566_s11 = inlined_call_operand.vmem [shape: bf16[128,512], index: 11, kind: input, shape index: {}]   ;;  %s5567_s12 = inlined_call_operand.vmem [shape: f32[1,512], index: 12, kind: input, shape index: {}]   ;;  %s5568_s13 = inlined_call_operand.vmem [shape: bf16[512,512], index: 13, kind: input, shape index: {}]   ;;  %s5569_s14 = inlined_call_operand.vmem [shape: f32[1,512], index: 14, kind: input, shape index: {}]   ;;  %s5570_s15 = inlined_call_operand.vmem [shape: bf16[512,128], index: 15, kind: input, shape index: {}]   ;;  %s5571_s16 = inlined_call_operand.vmem [shape: f32[1,128], index: 16, kind: input, shape index: {}]   ;;  %s5572_s17 = inlined_call_operand.hbm [shape: f32[2,128], index: 17, kind: output, shape index: {}]  }
   0x1   :  { %5574 = sst [smem:[#allocation12_spill]] %s5555_s0 }
   0x2   :  { %5575 = sst [smem:[#allocation13_spill]] %s5556_s1 }
   0x3   :  { %5576 = sst [smem:[#allocation14_spill]] %s5572_s17 }
   0x4   :  { %22 = vsyncpa [#allocation3], 0 }
   0x5   :  { %23 = vsyncpa [#allocation6], 0 }
   0x6   :  { %24 = vsyncpa [#allocation4], 0  ;;  %s54_s26 = sshll.u32 %s5562_s7, 4  ;;  %s3999_s27 = smov [#allocation5]   ;;  %s55_s26 = int_to_ptr.hbm [resolvable:$true] %s54_s26 }
   0x7   :  { %s56_s28 = sshll.u32 %s3999_s27, 4  ;;  %s5577_s30 = sld [smem:[#allocation13_spill]]  ;;  %s57_s28 = int_to_ptr.vmem [resolvable:$true] %s56_s28 }
   0x8   :  { %s4000_s19 = smov 64   ;;  %s4001_s1 = smov 4  }
   0x9   :  { %62 = dma.hbm_to_vmem [thread:$0]  %s55_s26, 1024, %s57_s28, [#allocation6], %s4000_s19, %s4000_s19, %s4001_s1  }
   0xa   :  { %s4002_s20 = smov [#allocation2]   ;;  %s69_s17 = sshll.u32 %s5564_s9, 4  ;;  %s70_s17 = int_to_ptr.hbm [resolvable:$true] %s69_s17 }
   0xb   :  { %s33_s21 = sshll.u32 %s4002_s20, 4  ;;  %s4003_s7 = smov [#allocation7]   ;;  %s34_s21 = int_to_ptr.vmem [resolvable:$true] %s33_s21 }
   0xc   :  { %s71_s24 = sshll.u32 %s4003_s7, 4  ;;  %s72_s24 = int_to_ptr.vmem [resolvable:$true] %s71_s24 }
   0xd   :  { %s31_s18 = sshll.u32 %s5577_s30, 4  ;;  %s32_s18 = int_to_ptr.hbm [resolvable:$true] %s31_s18 }
   0xe   :  { %39 = dma.hbm_to_vmem [thread:$0]  %s32_s18, 2048, %s34_s21, [#allocation3], %s4000_s19, %s4000_s19, %s4001_s1  }
   0xf   :  { %77 = dma.hbm_to_vmem [thread:$0]  %s70_s17, 1024, %s72_s24, [#allocation6], %s4000_s19, %s4000_s19, %s4001_s1  }
  0x10   :  { %3993 = dma.done.wait [#allocation3], 2048  }
  0x11   :  { %3994 = vsyncadd [#allocation3], 4294965248 }
  0x12   :  { %3995 = dma.done.wait [#allocation6], 2048  }
  0x13   :  { %3996 = vsyncadd [#allocation6], 4294965248  ;;  %v3597_v0 = vld [vmem:[#allocation2 + $0x38] sm:$0xff]  ;;  %v3596_v2 = vld [vmem:[#allocation2 + $0x30] sm:$0xff]  ;;  %s5578_s25 = sld [smem:[#allocation12_spill]]  ;;  %s4005_s1 = smov 16   ;;  %v316_v59 = vlaneseq }
  0x14   :  { %v3605_v1 = vld [vmem:[#allocation2 + $0x78] sm:$0xff]  ;;  %248 = vmatpush.bf16.msra.mxu0 %v3597_v0  ;;  %v3604_v3 = vld [vmem:[#allocation2 + $0x70] sm:$0xff]  ;;  %v3595_v4 = vld [vmem:[#allocation2 + $0x28] sm:$0xff] }
  0x15   :  { %262 = vmatpush.bf16.msra.mxu1 %v3605_v1  ;;  %v3603_v5 = vld [vmem:[#allocation2 + $0x68] sm:$0xff]  ;;  %v3594_v6 = vld [vmem:[#allocation2 + $0x20] sm:$0xff]  ;;  %v3593_v8 = vld [vmem:[#allocation2 + $0x18] sm:$0xff]  ;;  %v320_v60 = vand.u32 127, %v316_v59 }
  0x16   :  { %v3602_v7 = vld [vmem:[#allocation2 + $0x60] sm:$0xff]  ;;  %v3601_v9 = vld [vmem:[#allocation2 + $0x58] sm:$0xff]  ;;  %v3592_v10 = vld [vmem:[#allocation2 + $0x10] sm:$0xff] }
  0x17   :  { %v3600_v11 = vld [vmem:[#allocation2 + $0x50] sm:$0xff]  ;;  %v3591_v12 = vld [vmem:[#allocation2 + $0x8] sm:$0xff]  ;;  %v3590_v14 = vld [vmem:[#allocation2] sm:$0xff]  ;;  %vm351_vm8 = vcmp.ge.s32.totalorder %v320_v60, 16  ;;  %vm358_vm9 = vcmp.lt.s32.totalorder %v320_v60, 112 }
  0x18   :  { %249 = vmatpush.bf16.msra.mxu0 %v3596_v2  ;;  %v3599_v13 = vld [vmem:[#allocation2 + $0x48] sm:$0xff]  ;;  %v3598_v15 = vld [vmem:[#allocation2 + $0x40] sm:$0xff] }
  0x19   :  { %263 = vmatpush.bf16.msra.mxu1 %v3604_v3  ;;  %v2640_v16 = vld [vmem:[%s5578_s25] sm:$0xf]  ;;  %v3589_v17 = vld [vmem:[%s5578_s25 + $0x4] sm:$0xf0]  ;;  %v3588_v18 = vld [vmem:[%s5578_s25 + $0x4] sm:$0xf] }
  0x1a   :  { %v2642_v19 = vld [vmem:[%s5578_s25 + $0x8] sm:$0xf0]  ;;  %v2641_v20 = vor.u32 %v3589_v17, %v2640_v16  ;;  %v3830_v22 = vld [vmem:[%s5557_s2] ss:$0 sm:$0xff]  ;;  %s4004_s2 = smov 112  }
  0x1b   :  { %v2645_v21 = vor.u32 %v3588_v18, %v2642_v19  ;;  %v345_v61 = vld [vmem:[%s5558_s3] sm:$0xff] }
  0x1c   :  { %250 = vmatpush.bf16.msra.mxu0 %v3595_v4  ;;  %v361_v63 = vperm.slane %v345_v61, 0  ;;  %v387_v1 = vperm.slane %v345_v61, 6  ;;  %v364_v3 = vperm.slane %v345_v61, 1  ;;  %v4133_v4 = vshrl.u32 %v316_v59, 7 }
  0x1d   :  { %264 = vmatpush.bf16.msra.mxu1 %v3603_v5  ;;  %v390_v5 = vperm.slane %v345_v61, 7  ;;  %v382_v17 = vperm.slane %v345_v61, 5 }
  0x1e   :  { %v325_v16 = vand.u32 7, %v4133_v4  ;;  %vm402_vm10 = vcmp.lt.s32.totalorder %v4133_v4, 1  ;;  %vm413_vm13 = vcmp.lt.s32.totalorder %v4133_v4, 7 }
  0x20   :  { %251 = vmatpush.bf16.msra.mxu0 %v3594_v6  ;;  %v377_v6 = vperm.slane %v345_v61, 4  ;;  %vm4153_vm11 = vcmp.ge.s32.totalorder %v325_v16, 1  ;;  %vm4165_vm14 = vcmp.lt.s32.totalorder %v325_v16, 7 }
  0x21   :  { %265 = vmatpush.bf16.msra.mxu1 %v3602_v7 }
  0x24   :  { %252 = vmatpush.bf16.msra.mxu0 %v3593_v8 }
  0x25   :  { %266 = vmatpush.bf16.msra.mxu1 %v3601_v9  ;;  %v369_v9 = vperm.slane %v345_v61, 2 }
  0x28   :  { %253 = vmatpush.bf16.msra.mxu0 %v3592_v10  ;;  %v374_v10 = vperm.slane %v345_v61, 3 }
  0x29   :  { %267 = vmatpush.bf16.msra.mxu1 %v3600_v11 }
  0x2c   :  { %254 = vmatpush.bf16.msra.mxu0 %v3591_v12  ;;  %v3831_v12 = vld [vmem:[%s5558_s3 + $0x8] ss:$0 sm:$0xff] }
  0x2d   :  { %268 = vmatpush.bf16.msra.mxu1 %v3599_v13 }
  0x30   :  { %255 = vmatpush.bf16.msra.mxu0 %v3590_v14 }
  0x31   :  { %269 = vmatpush.bf16.msra.mxu1 %v3598_v15  ;;  %v318_v15 = vadd.s32 8, %v4133_v4 }
  0x33   :  { %256 = vmatmul.bf16.vlgmr.msra.gmra.mxu0 %v2641_v20 }
  0x34   :  { %270 = vmatmul.bf16.vlgmr.msra.gmra.mxu1 %v2645_v21 }
  0xb0   :  { %v257_v23 = vpop.f32.mrf.mxu0 }
  0xb1   :  { %v271_v24 = vpop.f32.mrf.mxu1  ;;  %v258_v25 = vadd.f32 %v3830_v22, %v257_v23 }
  0xb3   :  { %v272_v26 = vadd.f32 %v271_v24, %v258_v25 }
  0xb5   :  { %v2710_v27 = vmul.f32 -1.442695, %v272_v26 }
  0xb7   :  { %3837 = vpow2.f32 %v2710_v27 }
  0xb8   :  { %v259_v28 = vpop.f32.mrf.mxu0 }
  0xb9   :  { %v260_v29 = vadd.f32 %v3830_v22, %v259_v28  ;;  %v273_v30 = vpop.f32.mrf.mxu1 }
  0xbb   :  { %v274_v31 = vadd.f32 %v273_v30, %v260_v29 }
  0xbd   :  { %v3838_v32 = vpop.eup %3837  ;;  %v2711_v33 = vmul.f32 -1.442695, %v274_v31 }
  0xbe   :  { %v282_v34 = vadd.f32 1.0, %v3838_v32 }
  0xbf   :  { %3839 = vpow2.f32 %v2711_v33 }
  0xc0   :  { %3841 = vrcp.f32 %v282_v34  ;;  %v295_v40 = vand.u32 2147483648, %v282_v34  ;;  %v293_v42 = vand.u32 2147483647, %v282_v34  ;;  %vm289_vm1 = vweird.f32 %v282_v34 }
  0xc2   :  { %v296_v45 = vor.u32 1.1754944e-38, %v295_v40  ;;  %vm294_vm3 = vcmp.eq.f32.partialorder %v293_v42, 8.507059e+37 }
  0xc5   :  { %v3840_v35 = vpop.eup %3839 }
  0xc6   :  { %v3842_v36 = vpop.eup %3841  ;;  %v283_v37 = vadd.f32 1.0, %v3840_v35 }
  0xc7   :  { %v285_v38 = vmul.f32 %v3842_v36, %v282_v34  ;;  %vm290_vm0 = vweird.f32 %v3842_v36  ;;  %v3613_v34 = vld [vmem:[%s5560_s5 + $0x38] sm:$0xff] }
  0xc8   :  { %3843 = vrcp.f32 %v283_v37  ;;  %vm291_vm2 = vmor %vm289_vm1, %vm290_vm0  ;;  %v310_v51 = vand.u32 2147483648, %v283_v37  ;;  %v308_v53 = vand.u32 2147483647, %v283_v37  ;;  %vm304_vm5 = vweird.f32 %v283_v37  ;;  %558 = vmatpush.bf16.msra.mxu2 %v3613_v34 }
  0xc9   :  { %v286_v39 = vsub.f32 1.0, %v285_v38 }
  0xca   :  { %v311_v55 = vor.u32 1.1754944e-38, %v310_v51  ;;  %vm309_vm7 = vcmp.eq.f32.partialorder %v308_v53, 8.507059e+37 }
  0xcb   :  { %v287_v41 = vmul.f32 %v3842_v36, %v286_v39 }
  0xcd   :  { %v288_v43 = vadd.f32 %v3842_v36, %v287_v41 }
  0xce   :  { %v3844_v44 = vpop.eup %3843 }
  0xcf   :  { %v292_v46 = vsel %vm291_vm2, %v3842_v36, %v288_v43  ;;  %v300_v47 = vmul.f32 %v3844_v44, %v283_v37  ;;  %vm305_vm4 = vweird.f32 %v3844_v44 }
  0xd0   :  { %v297_v48 = vsel %vm294_vm3, %v296_v45, %v292_v46  ;;  %vm306_vm6 = vmor %vm304_vm5, %vm305_vm4 }
  0xd1   :  { %v4121_v49 = vmul.f32 %v297_v48, %v272_v26  ;;  %v301_v50 = vsub.f32 1.0, %v300_v47  ;;  %v3612_v48 = vld [vmem:[%s5560_s5 + $0x30] sm:$0xff] }
  0xd2   :  { %559 = vmatpush.bf16.msra.mxu2 %v3612_v48 }
  0xd3   :  { %v302_v52 = vmul.f32 %v3844_v44, %v301_v50  ;;  %354 = vrot.lane.b32.xlu1 %v4121_v49, %s4004_s2  ;;  %347 = vrot.lane.b32.xlu0 %v4121_v49, %s4005_s1  ;;  %v365_v11 = vmul.f32 %v364_v3, %v4121_v49  ;;  %v391_v14 = vmul.f32 %v390_v5, %v4121_v49 }
  0xd4   :  { %v378_v19 = vmul.f32 %v377_v6, %v4121_v49 }
  0xd5   :  { %v303_v54 = vadd.f32 %v3844_v44, %v302_v52 }
  0xd7   :  { %v307_v56 = vsel %vm306_vm6, %v3844_v44, %v303_v54 }
  0xd8   :  { %v312_v57 = vsel %vm309_vm7, %v311_v55, %v307_v56 }
  0xd9   :  { %v4125_v58 = vmul.f32 %v312_v57, %v274_v31  ;;  %v332_v31 = vand.u32 7, %v318_v15 }
  0xdb   :  { %356 = vrot.lane.b32.xlu1 %v4125_v58, %s4004_s2  ;;  %349 = vrot.lane.b32.xlu0 %v4125_v58, %s4005_s1  ;;  %v366_v24 = vmul.f32 %v364_v3, %v4125_v58  ;;  %v392_v28 = vmul.f32 %v390_v5, %v4125_v58  ;;  %v379_v37 = vmul.f32 %v377_v6, %v4125_v58  ;;  %vm4157_vm12 = vcmp.ge.s32.totalorder %v332_v31, 1  ;;  %v3611_v3 = vld [vmem:[%s5560_s5 + $0x28] sm:$0xff]  ;;  %v3832_v5 = vld [vmem:[%s5559_s4] ss:$0 sm:$0xff] }
  0xdc   :  { %vm4169_vm15 = vcmp.lt.s32.totalorder %v332_v31, 7  ;;  %560 = vmatpush.bf16.msra.mxu2 %v3611_v3  ;;  %v3620_v3 = vld [vmem:[#allocation5 + $0x30] sm:$0xff] }
 0x145   :  { %v355_v62 = vpop.permute.xlu1 %354  ;;  %v348_v0 = vpop.permute.xlu0 %347 }
 0x146   :  { %v352_v2 = vsel %vm351_vm8, %v348_v0, 0.0  ;;  %v359_v13 = vsel %vm358_vm9, %v355_v62, 0.0 }
 0x147   :  { %v362_v7 = vmul.f32 %v361_v63, %v352_v2  ;;  %v388_v8 = vmul.f32 %v387_v1, %v352_v2  ;;  %v370_v26 = vmul.f32 %v369_v9, %v359_v13  ;;  %v375_v27 = vmul.f32 %v374_v10, %v352_v2 }
 0x148   :  { %v396_v30 = vmul.f32 %v3831_v12, %v359_v13  ;;  %v383_v50 = vmul.f32 %v382_v17, %v359_v13 }
 0x149   :  { %v367_v18 = vadd.f32 %v365_v11, %v362_v7  ;;  %v393_v22 = vadd.f32 %v391_v14, %v388_v8  ;;  %v380_v42 = vadd.f32 %v378_v19, %v375_v27  ;;  %v3610_v11 = vld [vmem:[%s5560_s5 + $0x20] sm:$0xff]  ;;  %v3609_v14 = vld [vmem:[%s5560_s5 + $0x18] sm:$0xff] }
 0x14a   :  { %561 = vmatpush.bf16.msra.mxu2 %v3610_v11 }
 0x14b   :  { %v372_v35 = vadd.f32 %v370_v26, %v367_v18  ;;  %v398_v39 = vadd.f32 %v396_v30, %v393_v22  ;;  %v385_v59 = vadd.f32 %v383_v50, %v380_v42  ;;  %v3607_v18 = vld [vmem:[%s5560_s5 + $0x8] sm:$0xff] }
 0x14d   :  { %v357_v20 = vpop.permute.xlu1 %356  ;;  %v350_v21 = vpop.permute.xlu0 %349  ;;  %v400_v51 = vrot.slane %v372_v35, 7  ;;  %v411_v54 = vrot.slane %v398_v39, 1 }
 0x14e   :  { %v360_v23 = vsel %vm358_vm9, %v357_v20, 0.0  ;;  %v353_v25 = vsel %vm351_vm8, %v350_v21, 0.0  ;;  %562 = vmatpush.bf16.msra.mxu2 %v3609_v14  ;;  %vm506_vm8 = vcmask 1041409  }
 0x14f   :  { %v363_v29 = vmul.f32 %v361_v63, %v353_v25  ;;  %v376_v32 = vmul.f32 %v374_v10, %v353_v25  ;;  %v389_v33 = vmul.f32 %v387_v1, %v353_v25  ;;  %v371_v36 = vmul.f32 %v369_v9, %v360_v23 }
 0x150   :  { %v397_v40 = vmul.f32 %v3831_v12, %v360_v23  ;;  %v384_v52 = vmul.f32 %v382_v17, %v360_v23  ;;  %v3608_v17 = vld [vmem:[%s5560_s5 + $0x10] sm:$0xff]  ;;  %v3606_v23 = vld [vmem:[%s5560_s5] sm:$0xff] }
 0x151   :  { %v368_v38 = vadd.f32 %v366_v24, %v363_v29  ;;  %v394_v41 = vadd.f32 %v392_v28, %v389_v33  ;;  %v381_v44 = vadd.f32 %v379_v37, %v376_v32 }
 0x152   :  { %563 = vmatpush.bf16.msra.mxu2 %v3608_v17 }
 0x153   :  { %v373_v43 = vadd.f32 %v371_v36, %v368_v38  ;;  %v399_v47 = vadd.f32 %v397_v40, %v394_v41  ;;  %v386_v60 = vadd.f32 %v384_v52, %v381_v44 }
 0x155   :  { %v401_v53 = vrot.slane %v373_v43, 7  ;;  %v412_v57 = vrot.slane %v399_v47, 1 }
 0x156   :  { %564 = vmatpush.bf16.msra.mxu2 %v3607_v18 }
 0x157   :  { %v403_v61 = vsel %vm402_vm10, %v400_v51, %v401_v53  ;;  %v404_v62 = vsel %vm402_vm10, %v401_v53, %v400_v51  ;;  %v414_v1 = vsel %vm413_vm13, %v411_v54, %v412_v57  ;;  %v415_v2 = vsel %vm413_vm13, %v412_v57, %v411_v54 }
 0x158   :  { %v407_v63 = vsel %vm4153_vm11, %v404_v62, 0.0  ;;  %v408_v0 = vsel %vm4157_vm12, %v403_v61, 0.0  ;;  %v418_v8 = vsel %vm4165_vm14, %v414_v1, 0.0  ;;  %v419_v9 = vsel %vm4169_vm15, %v415_v2, 0.0  ;;  %v3621_v2 = vld [vmem:[#allocation5 + $0x38] sm:$0xff] }
 0x159   :  { %v409_v6 = vadd.f32 %v407_v63, %v385_v59  ;;  %v410_v7 = vadd.f32 %v408_v0, %v386_v60  ;;  %660 = vmatpush.bf16.msra.mxu3 %v3621_v2  ;;  %v3657_v2 = vld [vmem:[%s5566_s11 + $0xd4] sm:$0xf0] }
 0x15a   :  { %565 = vmatpush.bf16.msra.mxu2 %v3606_v23 }
 0x15b   :  { %v420_v10 = vadd.f32 %v418_v8, %v409_v6  ;;  %v421_v4 = vadd.f32 %v419_v9, %v410_v7  ;;  %v3618_v6 = vld [vmem:[#allocation5 + $0x20] sm:$0xff]  ;;  %v3617_v7 = vld [vmem:[#allocation5 + $0x18] sm:$0xff]  ;;  %v3616_v8 = vld [vmem:[#allocation5 + $0x10] sm:$0xff] }
 0x15c   :  { %v3615_v9 = vld [vmem:[#allocation5 + $0x8] sm:$0xff] }
 0x15d   :  { %v426_v12 = vadd.f32 %v3832_v5, %v420_v10  ;;  %v427_v13 = vadd.f32 %v3832_v5, %v421_v4  ;;  %661 = vmatpush.bf16.msra.mxu3 %v3620_v3  ;;  %v3619_v5 = vld [vmem:[#allocation5 + $0x28] sm:$0xff]  ;;  %v3614_v10 = vld [vmem:[#allocation5] sm:$0xff] }
 0x15e   :  { %v3833_v4 = vld [vmem:[%s5561_s6] ss:$0 sm:$0xff]  ;;  %v3655_v3 = vld [vmem:[%s5566_s11 + $0xcc] sm:$0xf]  ;;  %s5601_s6 = sld [smem:[#allocation14_spill]] }
 0x15f   :  { %v2712_v15 = vmul.f32 -1.442695, %v426_v12  ;;  %v2713_v16 = vmul.f32 -1.442695, %v427_v13 }
 0x161   :  { %3845 = vpow2.f32 %v2712_v15  ;;  %662 = vmatpush.bf16.msra.mxu3 %v3619_v5 }
 0x162   :  { %3847 = vpow2.f32 %v2713_v16 }
 0x165   :  { %663 = vmatpush.bf16.msra.mxu3 %v3618_v6 }
 0x167   :  { %v3846_v19 = vpop.eup %3845 }
 0x168   :  { %v3848_v20 = vpop.eup %3847  ;;  %v434_v21 = vadd.f32 1.0, %v3846_v19 }
 0x169   :  { %v435_v22 = vadd.f32 1.0, %v3848_v20  ;;  %664 = vmatpush.bf16.msra.mxu3 %v3617_v7  ;;  %v2920_v7 = vld [vmem:[%s5566_s11 + $0xd8] sm:$0xf0] }
 0x16a   :  { %3849 = vrcp.f32 %v434_v21  ;;  %v447_v30 = vand.u32 2147483648, %v434_v21  ;;  %v445_v33 = vand.u32 2147483647, %v434_v21  ;;  %vm441_vm2 = vweird.f32 %v434_v21 }
 0x16b   :  { %3851 = vrcp.f32 %v435_v22  ;;  %v462_v31 = vand.u32 2147483648, %v435_v22  ;;  %v460_v35 = vand.u32 2147483647, %v435_v22  ;;  %vm456_vm3 = vweird.f32 %v435_v22 }
 0x16c   :  { %v448_v38 = vor.u32 1.1754944e-38, %v447_v30  ;;  %vm446_vm6 = vcmp.eq.f32.partialorder %v445_v33, 8.507059e+37  ;;  %v3628_v30 = vld [vmem:[#allocation7 + $0x30] sm:$0xff]  ;;  %v3625_v33 = vld [vmem:[#allocation7 + $0x18] sm:$0xff] }
 0x16d   :  { %v463_v39 = vor.u32 1.1754944e-38, %v462_v31  ;;  %vm461_vm7 = vcmp.eq.f32.partialorder %v460_v35, 8.507059e+37  ;;  %665 = vmatpush.bf16.msra.mxu3 %v3616_v8  ;;  %v3627_v31 = vld [vmem:[#allocation7 + $0x28] sm:$0xff]  ;;  %v2894_v8 = vld [vmem:[%s5566_s11 + $0xa0] sm:$0xf] }
 0x16e   :  { %v3623_v35 = vld [vmem:[#allocation7 + $0x8] sm:$0xff] }
 0x170   :  { %v3850_v24 = vpop.eup %3849 }
 0x171   :  { %v3852_v25 = vpop.eup %3851  ;;  %v437_v26 = vmul.f32 %v3850_v24, %v434_v21  ;;  %vm442_vm0 = vweird.f32 %v3850_v24  ;;  %666 = vmatpush.bf16.msra.mxu3 %v3615_v9  ;;  %v2923_v9 = vor.u32 %v3655_v3, %v2920_v7  ;;  %v2854_v3 = vld [vmem:[%s5566_s11 + $0x48] sm:$0xf] }
 0x172   :  { %v452_v27 = vmul.f32 %v3852_v25, %v435_v22  ;;  %vm457_vm1 = vweird.f32 %v3852_v25  ;;  %vm443_vm4 = vmor %vm441_vm2, %vm442_vm0 }
 0x173   :  { %v438_v28 = vsub.f32 1.0, %v437_v26  ;;  %vm458_vm5 = vmor %vm456_vm3, %vm457_vm1 }
 0x174   :  { %v453_v29 = vsub.f32 1.0, %v452_v27 }
 0x175   :  { %v439_v32 = vmul.f32 %v3850_v24, %v438_v28  ;;  %667 = vmatpush.bf16.msra.mxu3 %v3614_v10  ;;  %v3652_v10 = vld [vmem:[%s5566_s11 + $0xac] sm:$0xf0] }
 0x176   :  { %v454_v34 = vmul.f32 %v3852_v25, %v453_v29  ;;  %v3629_v29 = vld [vmem:[#allocation7 + $0x38] sm:$0xff] }
 0x177   :  { %v440_v36 = vadd.f32 %v3850_v24, %v439_v32  ;;  %769 = vmatpush.bf16.msrb.mxu0 %v3629_v29  ;;  %v3626_v32 = vld [vmem:[#allocation7 + $0x20] sm:$0xff] }
 0x178   :  { %v455_v37 = vadd.f32 %v3852_v25, %v454_v34  ;;  %v3624_v34 = vld [vmem:[#allocation7 + $0x10] sm:$0xff] }
 0x179   :  { %v444_v40 = vsel %vm443_vm4, %v3850_v24, %v440_v36  ;;  %v3834_v36 = vld [vmem:[%s5563_s8] ss:$0 sm:$0xff] }
 0x17a   :  { %v459_v41 = vsel %vm458_vm5, %v3852_v25, %v455_v37  ;;  %v449_v42 = vsel %vm446_vm6, %v448_v38, %v444_v40  ;;  %v3622_v38 = vld [vmem:[#allocation7] sm:$0xff] }
 0x17b   :  { %v464_v43 = vsel %vm461_vm7, %v463_v39, %v459_v41  ;;  %v4210_v44 = vmul.f32 %v449_v42, %v426_v12  ;;  %770 = vmatpush.bf16.msrb.mxu0 %v3628_v30  ;;  %v2926_v41 = vld [vmem:[%s5566_s11 + $0xe0] sm:$0xf]  ;;  %v3660_v42 = vld [vmem:[%s5566_s11 + $0xec] sm:$0xf0] }
 0x17c   :  { %v4212_v45 = vmul.f32 %v464_v43, %v427_v13  ;;  %v3658_v43 = vld [vmem:[%s5566_s11 + $0xe4] sm:$0xf] }
 0x17d   :  { %v468_v46 = vrot.slane %v4210_v44, 4 }
 0x17e   :  { %v474_v47 = vrot.slane %v4212_v45, 4 }
 0x17f   :  { %v469_v48 = vadd.f32 %v468_v46, %v4210_v44  ;;  %771 = vmatpush.bf16.msrb.mxu0 %v3627_v31 }
 0x180   :  { %v475_v50 = vadd.f32 %v474_v47, %v4212_v45  ;;  %v2927_v47 = vor.u32 %v3660_v42, %v2926_v41 }
 0x181   :  { %v470_v51 = vrot.slane %v469_v48, 2 }
 0x182   :  { %v476_v52 = vrot.slane %v475_v50, 2  ;;  %988 = vmatpush.bf16.msrb.mxu1 %v2927_v47 }
 0x183   :  { %v471_v53 = vadd.f32 %v470_v51, %v469_v48  ;;  %772 = vmatpush.bf16.msrb.mxu0 %v3626_v32  ;;  %v2928_v48 = vld [vmem:[%s5566_s11 + $0xf0] sm:$0xf0]  ;;  %v3661_v51 = vld [vmem:[%s5566_s11 + $0xf4] sm:$0xf0] }
 0x184   :  { %v477_v54 = vadd.f32 %v476_v52, %v475_v50  ;;  %v2934_v50 = vld [vmem:[%s5566_s11 + $0xe8] sm:$0xf]  ;;  %v2931_v52 = vor.u32 %v3658_v43, %v2928_v48 }
 0x185   :  { %v472_v55 = vrot.slane %v471_v53, 1 }
 0x186   :  { %v478_v56 = vrot.slane %v477_v54, 1  ;;  %1002 = vmatpush.bf16.msrb.mxu2 %v2931_v52  ;;  %v3644_v52 = vld [vmem:[%s5566_s11 + $0x6c] sm:$0xf0] }
 0x187   :  { %v473_v57 = vadd.f32 %v472_v55, %v471_v53  ;;  %773 = vmatpush.bf16.msrb.mxu0 %v3625_v33  ;;  %v2935_v53 = vor.u32 %v3661_v51, %v2934_v50  ;;  %v2936_v55 = vld [vmem:[%s5566_s11 + $0xf8] sm:$0xf0]  ;;  %v2862_v51 = vld [vmem:[%s5566_s11 + $0x60] sm:$0xf] }
 0x188   :  { %v479_v59 = vadd.f32 %v478_v56, %v477_v54  ;;  %v3659_v54 = vld [vmem:[%s5566_s11 + $0xec] sm:$0xf]  ;;  %v2910_v56 = vld [vmem:[%s5566_s11 + $0xc0] sm:$0xf] }
 0x189   :  { %v480_v60 = vpack.c.bf16 %v473_v57, %v473_v57  ;;  %v2939_v57 = vor.u32 %v3659_v54, %v2936_v55  ;;  %1016 = vmatpush.bf16.msrb.mxu3 %v2935_v53  ;;  %v3642_v53 = vld [vmem:[%s5566_s11 + $0x64] sm:$0xf]  ;;  %v2863_v54 = vor.u32 %v3644_v52, %v2862_v51  ;;  %v3645_v55 = vld [vmem:[%s5566_s11 + $0x74] sm:$0xf0]  ;;  %v3430_v52 = vld [vmem:[%s5568_s13 + $0x3c0] sm:$0xf] }
 0x18a   :  { %v481_v61 = vpack.c.bf16 %v479_v59, %v479_v59  ;;  %v3656_v59 = vld [vmem:[%s5566_s11 + $0xcc] sm:$0xf0] }
 0x18b   :  { %v504_v62 = vunpack.c.l.b16 %v480_v60  ;;  %774 = vmatpush.bf16.msrb.mxu0 %v3624_v34  ;;  %v3654_v60 = vld [vmem:[%s5566_s11 + $0xc4] sm:$0xf] }
 0x18c   :  { %v505_v63 = vunpack.c.l.b16 %v481_v61  ;;  %v2912_v61 = vld [vmem:[%s5566_s11 + $0xd0] sm:$0xf0] }
 0x18e   :  { %v507_v0 = vsel %vm506_vm8, %v505_v63, %v504_v62  ;;  %v2911_v63 = vor.u32 %v3656_v59, %v2910_v56  ;;  %v3643_v59 = vld [vmem:[%s5566_s11 + $0x6c] sm:$0xf] }
 0x18f   :  { %v508_v1 = vpack.c.b16 %v507_v0, %v507_v0  ;;  %775 = vmatpush.bf16.msrb.mxu0 %v3623_v35  ;;  %v2915_v0 = vor.u32 %v3654_v60, %v2912_v61  ;;  %v2872_v60 = vld [vmem:[%s5566_s11 + $0x78] sm:$0xf0] }
 0x190   :  { %989 = vmatpush.bf16.msrb.mxu1 %v2911_v63  ;;  %v2875_v61 = vor.u32 %v3643_v59, %v2872_v60  ;;  %v3640_v63 = vld [vmem:[%s5566_s11 + $0x4c] sm:$0xf0]  ;;  %v3030_v60 = vld [vmem:[%s5568_s13 + $0xa0] sm:$0xf] }
 0x191   :  { %566 = vmatmul.bf16.vlgmr.msra.gmra.mxu2 %v508_v1  ;;  %v2918_v1 = vld [vmem:[%s5566_s11 + $0xc8] sm:$0xf] }
 0x192   :  { %v2919_v6 = vor.u32 %v3657_v2, %v2918_v1  ;;  %1003 = vmatpush.bf16.msrb.mxu2 %v2915_v0  ;;  %v3638_v0 = vld [vmem:[%s5566_s11 + $0x44] sm:$0xf]  ;;  %v2848_v2 = vld [vmem:[%s5566_s11 + $0x50] sm:$0xf0] }
 0x193   :  { %776 = vmatpush.bf16.msrb.mxu0 %v3622_v38 }
 0x194   :  { %1017 = vmatpush.bf16.msrb.mxu3 %v2919_v6  ;;  %v2851_v6 = vor.u32 %v3638_v0, %v2848_v2  ;;  %v3780_v0 = vld [vmem:[%s5568_s13 + $0x3ac] sm:$0xf0]  ;;  %v3174_v2 = vld [vmem:[%s5568_s13 + $0x1c0] sm:$0xf] }
 0x197   :  { %1030 = vmatpush.bf16.msra.mxu0 %v2939_v57 }
 0x19b   :  { %1031 = vmatpush.bf16.msra.mxu0 %v2923_v9  ;;  %v2856_v9 = vld [vmem:[%s5566_s11 + $0x58] sm:$0xf0] }
 0x214   :  { %v567_v11 = vpop.f32.mrf.mxu2 }
 0x215   :  { %v568_v12 = vadd.f32 %v3833_v4, %v567_v11  ;;  %v3650_v4 = vld [vmem:[%s5566_s11 + $0xa4] sm:$0xf]  ;;  %v2896_v11 = vld [vmem:[%s5566_s11 + $0xb0] sm:$0xf0] }
 0x217   :  { %v2746_v13 = vmul.f32 -1.442695, %v568_v12 }
 0x219   :  { %3853 = vpow2.f32 %v2746_v13  ;;  %v2895_v13 = vor.u32 %v3652_v10, %v2894_v8  ;;  %v3639_v8 = vld [vmem:[%s5566_s11 + $0x4c] sm:$0xf] }
 0x21a   :  { %v2859_v10 = vor.u32 %v3639_v8, %v2856_v9  ;;  %v4487_v9 = vld [vmem:[%s5567_s12] sm:$0xf] }
 0x21b   :  { %990 = vmatpush.bf16.msrb.mxu1 %v2895_v13 }
 0x21c   :  { %v569_v14 = vpop.f32.mrf.mxu2 }
 0x21d   :  { %v2899_v14 = vor.u32 %v3650_v4, %v2896_v11  ;;  %v2830_v4 = vld [vmem:[%s5566_s11 + $0x20] sm:$0xf]  ;;  %v3636_v11 = vld [vmem:[%s5566_s11 + $0x2c] sm:$0xf0] }
 0x21e   :  { %v2831_v13 = vor.u32 %v3636_v11, %v2830_v4  ;;  %v823_v4 = vperm.slane %v4487_v9, 3 }
 0x21f   :  { %v3854_v15 = vpop.eup %3853  ;;  %1004 = vmatpush.bf16.msrb.mxu2 %v2899_v14  ;;  %v2832_v14 = vld [vmem:[%s5566_s11 + $0x30] sm:$0xf0] }
 0x220   :  { %v574_v16 = vadd.f32 1.0, %v3854_v15  ;;  %v3653_v15 = vld [vmem:[%s5566_s11 + $0xb4] sm:$0xf0] }
 0x222   :  { %3855 = vrcp.f32 %v574_v16  ;;  %v586_v20 = vand.u32 2147483648, %v574_v16  ;;  %v584_v22 = vand.u32 2147483647, %v574_v16  ;;  %vm580_vm10 = vweird.f32 %v574_v16 }
 0x224   :  { %v587_v24 = vor.u32 1.1754944e-38, %v586_v20  ;;  %vm585_vm12 = vcmp.eq.f32.partialorder %v584_v22, 8.507059e+37  ;;  %v2878_v20 = vld [vmem:[%s5566_s11 + $0x80] sm:$0xf]  ;;  %v3646_v22 = vld [vmem:[%s5566_s11 + $0x84] sm:$0xf] }
 0x228   :  { %v3856_v17 = vpop.eup %3855 }
 0x229   :  { %v576_v18 = vmul.f32 %v3856_v17, %v574_v16  ;;  %vm581_vm9 = vweird.f32 %v3856_v17  ;;  %v3651_v16 = vld [vmem:[%s5566_s11 + $0xac] sm:$0xf] }
 0x22a   :  { %vm582_vm11 = vmor %vm580_vm10, %vm581_vm9 }
 0x22b   :  { %v577_v19 = vsub.f32 1.0, %v576_v18 }
 0x22d   :  { %v578_v21 = vmul.f32 %v3856_v17, %v577_v19 }
 0x22f   :  { %v579_v23 = vadd.f32 %v3856_v17, %v578_v21  ;;  %v3648_v21 = vld [vmem:[%s5566_s11 + $0x8c] sm:$0xf0] }
 0x231   :  { %v583_v25 = vsel %vm582_vm11, %v3856_v17, %v579_v23  ;;  %v2904_v17 = vld [vmem:[%s5566_s11 + $0xb8] sm:$0xf0]  ;;  %v2880_v23 = vld [vmem:[%s5566_s11 + $0x90] sm:$0xf0] }
 0x232   :  { %v588_v26 = vsel %vm585_vm12, %v587_v24, %v583_v25  ;;  %v2907_v19 = vor.u32 %v3651_v16, %v2904_v17  ;;  %v2886_v24 = vld [vmem:[%s5566_s11 + $0x88] sm:$0xf]  ;;  %v2879_v25 = vor.u32 %v3648_v21, %v2878_v20  ;;  %v2883_v29 = vor.u32 %v3646_v22, %v2880_v23  ;;  %v3637_v16 = vld [vmem:[%s5566_s11 + $0x34] sm:$0xf0]  ;;  %v2840_v20 = vld [vmem:[%s5566_s11 + $0x38] sm:$0xf0] }
 0x233   :  { %v590_v27 = vmul.f32 %v588_v26, %v568_v12  ;;  %v2902_v12 = vld [vmem:[%s5566_s11 + $0xa8] sm:$0xf]  ;;  %v3649_v26 = vld [vmem:[%s5566_s11 + $0x94] sm:$0xf0]  ;;  %v2814_v22 = vld [vmem:[%s5566_s11] sm:$0xf] }
 0x234   :  { %v2903_v18 = vor.u32 %v3653_v15, %v2902_v12  ;;  %v2887_v30 = vor.u32 %v3649_v26, %v2886_v24  ;;  %1032 = vmatpush.bf16.msra.mxu0 %v2907_v19  ;;  %991 = vmatpush.bf16.msrb.mxu1 %v2879_v25  ;;  %v3634_v12 = vld [vmem:[%s5566_s11 + $0x24] sm:$0xf]  ;;  %v2838_v15 = vld [vmem:[%s5566_s11 + $0x28] sm:$0xf]  ;;  %v3635_v19 = vld [vmem:[%s5566_s11 + $0x2c] sm:$0xf] }
 0x235   :  { %v591_v28 = vpack.c.bf16 %v590_v27, %v590_v27  ;;  %v3647_v27 = vld [vmem:[%s5566_s11 + $0x8c] sm:$0xf]  ;;  %1005 = vmatpush.bf16.msrb.mxu2 %v2883_v29  ;;  %v2835_v17 = vor.u32 %v3634_v12, %v2832_v14  ;;  %v2843_v21 = vor.u32 %v3635_v19, %v2840_v20  ;;  %v3632_v23 = vld [vmem:[%s5566_s11 + $0xc] sm:$0xf0]  ;;  %v3630_v24 = vld [vmem:[%s5566_s11 + $0x4] sm:$0xf] }
 0x236   :  { %1018 = vmatpush.bf16.msrb.mxu3 %v2903_v18  ;;  %v2839_v18 = vor.u32 %v3637_v16, %v2838_v15  ;;  %v2815_v25 = vor.u32 %v3632_v23, %v2814_v22  ;;  %v2816_v26 = vld [vmem:[%s5566_s11 + $0x10] sm:$0xf0]  ;;  %v821_v16 = vperm.slane %v4487_v9, 1 }
 0x237   :  { %668 = vmatmul.bf16.vlgmr.msra.gmra.mxu3 %v591_v28  ;;  %v2888_v28 = vld [vmem:[%s5566_s11 + $0x98] sm:$0xf0]  ;;  %v2819_v29 = vor.u32 %v3630_v24, %v2816_v26 }
 0x238   :  { %v2891_v32 = vor.u32 %v3647_v27, %v2888_v28  ;;  %992 = vmatpush.bf16.msrb.mxu1 %v2863_v54  ;;  %v2822_v27 = vld [vmem:[%s5566_s11 + $0x8] sm:$0xf]  ;;  %v3633_v28 = vld [vmem:[%s5566_s11 + $0x14] sm:$0xf0] }
 0x23a   :  { %1019 = vmatpush.bf16.msrb.mxu3 %v2887_v30  ;;  %1033 = vmatpush.bf16.msra.mxu0 %v2891_v32  ;;  %v2823_v30 = vor.u32 %v3633_v28, %v2822_v27  ;;  %v2824_v32 = vld [vmem:[%s5566_s11 + $0x18] sm:$0xf0] }
 0x23e   :  { %1034 = vmatpush.bf16.msra.mxu0 %v2875_v61  ;;  %v3684_v61 = vld [vmem:[%s5568_s13 + $0xac] sm:$0xf0] }
 0x242   :  { %1035 = vmatpush.bf16.msra.mxu0 %v2859_v10  ;;  %v820_v10 = vperm.slane %v4487_v9, 0 }
 0x246   :  { %1036 = vmatpush.bf16.msra.mxu0 %v2843_v21 }
 0x2ba   :  { %v669_v37 = vpop.f32.mrf.mxu3 }
 0x2bb   :  { %v670_v39 = vadd.f32 %v3834_v36, %v669_v37 }
 0x2bd   :  { %v2779_v40 = vmul.f32 -1.442695, %v670_v39 }
 0x2bf   :  { %3857 = vpow2.f32 %v2779_v40 }
 0x2c2   :  { %v671_v46 = vpop.f32.mrf.mxu3 }
 0x2c5   :  { %v3858_v62 = vpop.eup %3857 }
 0x2c6   :  { %v676_v5 = vadd.f32 1.0, %v3858_v62  ;;  %v2846_v62 = vld [vmem:[%s5566_s11 + $0x40] sm:$0xf] }
 0x2c7   :  { %v2847_v1 = vor.u32 %v3640_v63, %v2846_v62  ;;  %v3414_v62 = vld [vmem:[%s5568_s13 + $0x3a0] sm:$0xf]  ;;  %v3031_v63 = vor.u32 %v3684_v61, %v3030_v60 }
 0x2c8   :  { %3859 = vrcp.f32 %v676_v5  ;;  %v688_v35 = vand.u32 2147483648, %v676_v5  ;;  %v686_v37 = vand.u32 2147483647, %v676_v5  ;;  %vm682_vm14 = vweird.f32 %v676_v5 }
 0x2c9   :  { %993 = vmatpush.bf16.msrb.mxu1 %v2847_v1  ;;  %v3415_v1 = vor.u32 %v3780_v0, %v3414_v62 }
 0x2ca   :  { %v689_v39 = vor.u32 1.1754944e-38, %v688_v35  ;;  %vm687_vm0 = vcmp.eq.f32.partialorder %v686_v37, 8.507059e+37  ;;  %v3835_v35 = vld [vmem:[%s5565_s10] ss:$0 sm:$0xff] }
 0x2cd   :  { %994 = vmatpush.bf16.msrb.mxu1 %v2831_v13 }
 0x2ce   :  { %v3860_v31 = vpop.eup %3859 }
 0x2cf   :  { %v678_v33 = vmul.f32 %v3860_v31, %v676_v5  ;;  %vm683_vm13 = vweird.f32 %v3860_v31  ;;  %v3641_v5 = vld [vmem:[%s5566_s11 + $0x54] sm:$0xf0] }
 0x2d0   :  { %vm684_vm15 = vmor %vm682_vm14, %vm683_vm13  ;;  %v2855_v7 = vor.u32 %v3641_v5, %v2854_v3  ;;  %v3720_v3 = vld [vmem:[%s5568_s13 + $0x1cc] sm:$0xf0]  ;;  %v3302_v5 = vld [vmem:[%s5568_s13 + $0x2c0] sm:$0xf] }
 0x2d1   :  { %v679_v34 = vsub.f32 1.0, %v678_v33  ;;  %995 = vmatpush.bf16.msrb.mxu1 %v2815_v25 }
 0x2d3   :  { %v680_v36 = vmul.f32 %v3860_v31, %v679_v34 }
 0x2d5   :  { %v681_v38 = vadd.f32 %v3860_v31, %v680_v36 }
 0x2d7   :  { %v685_v40 = vsel %vm684_vm15, %v3860_v31, %v681_v38  ;;  %v3631_v31 = vld [vmem:[%s5566_s11 + $0xc] sm:$0xf] }
 0x2d8   :  { %v690_v41 = vsel %vm687_vm0, %v689_v39, %v685_v40  ;;  %v2827_v33 = vor.u32 %v3631_v31, %v2824_v32 }
 0x2d9   :  { %v693_v42 = vrot.slane %v690_v41, 1  ;;  %v694_v43 = vperm.slane %v690_v41, 0 }
 0x2da   :  { %1037 = vmatpush.bf16.msra.mxu0 %v2827_v33 }
 0x2db   :  { %v695_v46 = vperm.slane %v693_v42, 0  ;;  %v698_v47 = vmul.f32 %v694_v43, %v4210_v44  ;;  %v2864_v44 = vld [vmem:[%s5566_s11 + $0x70] sm:$0xf0]  ;;  %v3062_v42 = vld [vmem:[%s5568_s13 + $0xe0] sm:$0xf] }
 0x2dc   :  { %v2867_v56 = vor.u32 %v3642_v53, %v2864_v44  ;;  %v3692_v43 = vld [vmem:[%s5568_s13 + $0xec] sm:$0xf0]  ;;  %v3190_v44 = vld [vmem:[%s5568_s13 + $0x1e0] sm:$0xf] }
 0x2dd   :  { %v699_v48 = vmul.f32 %v695_v46, %v4212_v45  ;;  %v2870_v45 = vld [vmem:[%s5566_s11 + $0x68] sm:$0xf]  ;;  %v3063_v46 = vor.u32 %v3692_v43, %v3062_v42  ;;  %v3784_v53 = vld [vmem:[%s5568_s13 + $0x3cc] sm:$0xf0] }
 0x2de   :  { %v2871_v57 = vor.u32 %v3645_v55, %v2870_v45  ;;  %1006 = vmatpush.bf16.msrb.mxu2 %v2867_v56  ;;  %v3431_v54 = vor.u32 %v3784_v53, %v3430_v52  ;;  %v3724_v45 = vld [vmem:[%s5568_s13 + $0x1ec] sm:$0xf0]  ;;  %v3318_v55 = vld [vmem:[%s5568_s13 + $0x2e0] sm:$0xf] }
 0x2df   :  { %v700_v50 = vpack.c.bf16 %v699_v48, %v698_v47  ;;  %2066 = vmatpush.bf16.msra.mxu1 %v3063_v46  ;;  %v3046_v48 = vld [vmem:[%s5568_s13 + $0xc0] sm:$0xf]  ;;  %v3191_v56 = vor.u32 %v3724_v45, %v3190_v44  ;;  %v3716_v42 = vld [vmem:[%s5568_s13 + $0x1ac] sm:$0xf0] }
 0x2e0   :  { %1020 = vmatpush.bf16.msrb.mxu3 %v2871_v57  ;;  %v3756_v57 = vld [vmem:[%s5568_s13 + $0x2ec] sm:$0xf0]  ;;  %v3286_v46 = vld [vmem:[%s5568_s13 + $0x2a0] sm:$0xf] }
 0x2e1   :  { %777 = vmatmul.bf16.vlgmr.msrb.gmra.mxu0 %v700_v50  ;;  %v3688_v50 = vld [vmem:[%s5568_s13 + $0xcc] sm:$0xf0]  ;;  %v3319_v59 = vor.u32 %v3756_v57, %v3318_v55  ;;  %v3142_v53 = vld [vmem:[%s5568_s13 + $0x180] sm:$0xf] }
 0x2e2   :  { %1007 = vmatpush.bf16.msrb.mxu2 %v2851_v6  ;;  %v3047_v51 = vor.u32 %v3688_v50, %v3046_v48  ;;  %v3175_v6 = vor.u32 %v3720_v3, %v3174_v2  ;;  %v3382_v48 = vld [vmem:[%s5568_s13 + $0x360] sm:$0xf]  ;;  %v3772_v52 = vld [vmem:[%s5568_s13 + $0x36c] sm:$0xf0] }
 0x2e3   :  { %v3712_v57 = vld [vmem:[%s5568_s13 + $0x18c] sm:$0xf0]  ;;  %v3383_v62 = vor.u32 %v3772_v52, %v3382_v48 }
 0x2e4   :  { %1021 = vmatpush.bf16.msrb.mxu3 %v2855_v7  ;;  %2067 = vmatpush.bf16.msra.mxu1 %v3047_v51  ;;  %v3752_v7 = vld [vmem:[%s5568_s13 + $0x2cc] sm:$0xf0] }
 0x2e5   :  { %v3303_v8 = vor.u32 %v3752_v7, %v3302_v5  ;;  %v3744_v7 = vld [vmem:[%s5568_s13 + $0x28c] sm:$0xf0] }
 0x2e6   :  { %1008 = vmatpush.bf16.msrb.mxu2 %v2835_v17 }
 0x2e8   :  { %1022 = vmatpush.bf16.msrb.mxu3 %v2839_v18  ;;  %2068 = vmatpush.bf16.msra.mxu1 %v3031_v63  ;;  %v822_v18 = vperm.slane %v4487_v9, 2  ;;  %v3143_v63 = vor.u32 %v3712_v57, %v3142_v53 }
 0x2ea   :  { %1009 = vmatpush.bf16.msrb.mxu2 %v2819_v29  ;;  %v3014_v29 = vld [vmem:[%s5568_s13 + $0x80] sm:$0xf] }
 0x2ec   :  { %1023 = vmatpush.bf16.msrb.mxu3 %v2823_v30  ;;  %v3680_v30 = vld [vmem:[%s5568_s13 + $0x8c] sm:$0xf0] }
 0x2ed   :  { %v3015_v33 = vor.u32 %v3680_v30, %v3014_v29 }
 0x2ee   :  { %2079 = vmatpush.bf16.msra.mxu2 %v3191_v56 }
 0x2ef   :  { %2069 = vmatpush.bf16.msra.mxu1 %v3015_v33 }
 0x2f0   :  { %2092 = vmatpush.bf16.msra.mxu3 %v3319_v59 }
 0x2f2   :  { %2080 = vmatpush.bf16.msra.mxu2 %v3175_v6  ;;  %v3270_v6 = vld [vmem:[%s5568_s13 + $0x280] sm:$0xf] }
 0x2f4   :  { %2093 = vmatpush.bf16.msra.mxu3 %v3303_v8 }
 0x35e   :  { %v778_v34 = vpop.f32.mrf.mxu0 }
 0x35f   :  { %v779_v36 = vadd.f32 %v3835_v35, %v778_v34  ;;  %v3398_v34 = vld [vmem:[%s5568_s13 + $0x380] sm:$0xf] }
 0x361   :  { %v783_v39 = vadd.f32 %v779_v36, %v4121_v49  ;;  %v3446_v49 = vld [vmem:[%s5568_s13 + $0x3e0] sm:$0xf] }
 0x366   :  { %v780_v37 = vpop.f32.mrf.mxu0 }
 0x367   :  { %v781_v38 = vadd.f32 %v3835_v35, %v780_v37  ;;  %v3776_v35 = vld [vmem:[%s5568_s13 + $0x38c] sm:$0xf0] }
 0x369   :  { %v784_v40 = vadd.f32 %v781_v38, %v4125_v58  ;;  %v3788_v58 = vld [vmem:[%s5568_s13 + $0x3ec] sm:$0xf0] }
 0x36a   :  { %v3447_v47 = vor.u32 %v3788_v58, %v3446_v49  ;;  %v3748_v49 = vld [vmem:[%s5568_s13 + $0x2ac] sm:$0xf0]  ;;  %v2998_v58 = vld [vmem:[%s5568_s13 + $0x60] sm:$0xf] }
 0x36b   :  { %v785_v41 = vpack.c.bf16 %v784_v40, %v783_v39  ;;  %v3399_v39 = vor.u32 %v3776_v35, %v3398_v34  ;;  %v3287_v55 = vor.u32 %v3748_v49, %v3286_v46 }
 0x36c   :  { %2105 = vmatpush.bf16.msrb.mxu0 %v3447_v47  ;;  %v3676_v47 = vld [vmem:[%s5568_s13 + $0x6c] sm:$0xf0] }
 0x36d   :  { %996 = vmatmul.bf16.vlgmr.msrb.gmra.mxu1 %v785_v41  ;;  %1010 = vmatmul.bf16.vlgmr.msrb.gmra.mxu2 %v785_v41  ;;  %v2999_v56 = vor.u32 %v3676_v47, %v2998_v58 }
 0x36e   :  { %1024 = vmatmul.bf16.vlgmr.msrb.gmra.mxu3 %v785_v41  ;;  %1038 = vmatmul.bf16.vlgmr.msra.gmra.mxu0 %v785_v41  ;;  %v3158_v41 = vld [vmem:[%s5568_s13 + $0x1a0] sm:$0xf] }
 0x36f   :  { %v3159_v51 = vor.u32 %v3716_v42, %v3158_v41  ;;  %2094 = vmatpush.bf16.msra.mxu3 %v3287_v55  ;;  %2070 = vmatpush.bf16.msra.mxu1 %v2999_v56 }
 0x370   :  { %2106 = vmatpush.bf16.msrb.mxu0 %v3431_v54 }
 0x371   :  { %2081 = vmatpush.bf16.msra.mxu2 %v3159_v51 }
 0x374   :  { %2107 = vmatpush.bf16.msrb.mxu0 %v3415_v1 }
 0x375   :  { %2082 = vmatpush.bf16.msra.mxu2 %v3143_v63 }
 0x378   :  { %2108 = vmatpush.bf16.msrb.mxu0 %v3399_v39 }
 0x37c   :  { %2109 = vmatpush.bf16.msrb.mxu0 %v3383_v62 }
 0x3ea   :  { %v997_v11 = vpop.f32.mrf.mxu1 }
 0x3eb   :  { %v4491_v12 = vadd.f32 %v997_v11, %v820_v10  ;;  %v1039_v13 = vpop.f32.mrf.mxu0 }
 0x3ec   :  { %v4493_v14 = vadd.f32 %v1039_v13, %v823_v4 }
 0x3ed   :  { %v2940_v15 = vmul.f32 -1.442695, %v4491_v12 }
 0x3ee   :  { %v2943_v17 = vmul.f32 -1.442695, %v4493_v14 }
 0x3ef   :  { %3861 = vpow2.f32 %v2940_v15 }
 0x3f0   :  { %3863 = vpow2.f32 %v2943_v17  ;;  %v1011_v19 = vpop.f32.mrf.mxu2 }
 0x3f1   :  { %v4499_v20 = vadd.f32 %v1011_v19, %v821_v16  ;;  %v1025_v21 = vpop.f32.mrf.mxu3 }
 0x3f2   :  { %v4503_v22 = vadd.f32 %v1025_v21, %v822_v18  ;;  %v999_v23 = vpop.f32.mrf.mxu1 }
 0x3f3   :  { %v2941_v24 = vmul.f32 -1.442695, %v4499_v20  ;;  %v4506_v25 = vadd.f32 %v999_v23, %v820_v10  ;;  %v1041_v26 = vpop.f32.mrf.mxu0  ;;  %v3271_v23 = vor.u32 %v3744_v7, %v3270_v6 }
 0x3f4   :  { %v2942_v27 = vmul.f32 -1.442695, %v4503_v22  ;;  %v4509_v28 = vadd.f32 %v1041_v26, %v823_v4 }
 0x3f5   :  { %v3862_v31 = vpop.eup %3861  ;;  %3865 = vpow2.f32 %v2941_v24  ;;  %v2944_v32 = vmul.f32 -1.442695, %v4506_v25  ;;  %2095 = vmatpush.bf16.msra.mxu3 %v3271_v23 }
 0x3f6   :  { %v3864_v36 = vpop.eup %3863  ;;  %v4524_v37 = vadd.f32 1.0, %v3862_v31  ;;  %3867 = vpow2.f32 %v2942_v27  ;;  %v2947_v38 = vmul.f32 -1.442695, %v4509_v28 }
 0x3f7   :  { %v4527_v40 = vadd.f32 1.0, %v3864_v36  ;;  %3869 = vpow2.f32 %v2944_v32 }
 0x3f8   :  { %3871 = vrcp.f32 %v4524_v37  ;;  %v1013_v43 = vpop.f32.mrf.mxu2  ;;  %v1085_v60 = vand.u32 2147483647, %v4524_v37  ;;  %v1087_v1 = vand.u32 2147483648, %v4524_v37  ;;  %vm1081_vm1 = vweird.f32 %v4524_v37 }
 0x3f9   :  { %3873 = vrcp.f32 %v4527_v40  ;;  %v4560_v45 = vadd.f32 %v1013_v43, %v821_v16  ;;  %v1130_v5 = vand.u32 2147483647, %v4527_v40  ;;  %vm1126_vm2 = vweird.f32 %v4527_v40  ;;  %v1027_v27 = vpop.f32.mrf.mxu3 }
 0x3fa   :  { %3875 = vpow2.f32 %v2947_v38  ;;  %vm4583_vm3 = vcmp.eq.f32.partialorder %v1085_v60, 8.507059e+37  ;;  %v1132_v15 = vand.u32 2147483648, %v4527_v40  ;;  %v1088_v17 = vor.u32 1.1754944e-38, %v1087_v1 }
 0x3fb   :  { %v3866_v50 = vpop.eup %3865  ;;  %v2945_v4 = vmul.f32 -1.442695, %v4560_v45  ;;  %vm4592_vm5 = vcmp.eq.f32.partialorder %v1130_v5, 8.507059e+37  ;;  %v4610_v41 = vadd.f32 %v1027_v27, %v822_v18 }
 0x3fc   :  { %v3868_v54 = vpop.eup %3867  ;;  %v4558_v44 = vadd.f32 1.0, %v3866_v50  ;;  %v1133_v34 = vor.u32 1.1754944e-38, %v1132_v15 }
 0x3fd   :  { %v3870_v59 = vpop.eup %3869  ;;  %v4566_v61 = vadd.f32 1.0, %v3868_v54 }
 0x3fe   :  { %v3872_v0 = vpop.eup %3871  ;;  %3877 = vrcp.f32 %v4558_v44  ;;  %v4588_v16 = vadd.f32 1.0, %v3870_v59  ;;  %v1100_v31 = vand.u32 2147483647, %v4558_v44  ;;  %v1102_v38 = vand.u32 2147483648, %v4558_v44 }
 0x3ff   :  { %v3874_v2 = vpop.eup %3873  ;;  %v1077_v3 = vmul.f32 %v3872_v0, %v4524_v37  ;;  %3879 = vrcp.f32 %v4566_v61  ;;  %vm1082_vm4 = vweird.f32 %v3872_v0  ;;  %vm1096_vm10 = vweird.f32 %v4558_v44 }
 0x400   :  { %v3876_v8 = vpop.eup %3875  ;;  %v1122_v10 = vmul.f32 %v3874_v2, %v4527_v40  ;;  %3881 = vrcp.f32 %v4588_v16  ;;  %vm1127_vm6 = vweird.f32 %v3874_v2  ;;  %vm1083_vm7 = vmor %vm1081_vm1, %vm1082_vm4  ;;  %vm1111_vm11 = vweird.f32 %v4566_v61 }
 0x401   :  { %v1078_v11 = vsub.f32 1.0, %v1077_v3  ;;  %v4590_v21 = vadd.f32 1.0, %v3876_v8  ;;  %3883 = vpow2.f32 %v2945_v4  ;;  %vm1128_vm9 = vmor %vm1126_vm2, %vm1127_vm6  ;;  %vm4619_vm12 = vcmp.eq.f32.partialorder %v1100_v31, 8.507059e+37 }
 0x402   :  { %v1123_v19 = vsub.f32 1.0, %v1122_v10  ;;  %v1103_v51 = vor.u32 1.1754944e-38, %v1102_v38  ;;  %v1115_v57 = vand.u32 2147483647, %v4566_v61  ;;  %v1117_v60 = vand.u32 2147483648, %v4566_v61 }
 0x403   :  { %v1079_v24 = vmul.f32 %v3872_v0, %v1078_v11  ;;  %3885 = vrcp.f32 %v4590_v21  ;;  %vm1141_vm1 = vweird.f32 %v4588_v16  ;;  %v1192_v11 = vand.u32 2147483648, %v4590_v21 }
 0x404   :  { %v3878_v29 = vpop.eup %3877  ;;  %v1124_v30 = vmul.f32 %v3874_v2, %v1123_v19  ;;  %vm1186_vm6 = vweird.f32 %v4590_v21 }
 0x405   :  { %v4598_v32 = vpop.eup %3879  ;;  %v1080_v33 = vadd.f32 %v3872_v0, %v1079_v24  ;;  %v1092_v35 = vmul.f32 %v3878_v29, %v4558_v44  ;;  %vm1097_vm13 = vweird.f32 %v3878_v29  ;;  %v1118_v24 = vor.u32 1.1754944e-38, %v1117_v60  ;;  %v3764_v60 = vld [vmem:[%s5568_s13 + $0x32c] sm:$0xf0] }
 0x406   :  { %v1125_v36 = vadd.f32 %v3874_v2, %v1124_v30  ;;  %v1107_v39 = vmul.f32 %v4598_v32, %v4566_v61  ;;  %v3882_v18 = vpop.eup %3881  ;;  %vm1098_vm14 = vmor %vm1096_vm10, %vm1097_vm13  ;;  %vm1112_vm15 = vweird.f32 %v4598_v32  ;;  %v1193_v31 = vor.u32 1.1754944e-38, %v1192_v11  ;;  %v4745_v11 = vld [vmem:[%s5568_s13 + $0xc] sm:$0xf0] }
 0x407   :  { %v1084_v42 = vsel %vm1083_vm7, %v3872_v0, %v1080_v33  ;;  %v1093_v43 = vsub.f32 1.0, %v1092_v35  ;;  %v3884_v48 = vpop.eup %3883  ;;  %v1137_v53 = vmul.f32 %v3882_v18, %v4588_v16  ;;  %v1147_v0 = vand.u32 2147483648, %v4588_v16 }
 0x408   :  { %v1089_v37 = vsel %vm4583_vm3, %v1088_v17, %v1084_v42  ;;  %v1129_v46 = vsel %vm1128_vm9, %v3874_v2, %v1125_v36  ;;  %v1108_v9 = vsub.f32 1.0, %v1107_v39  ;;  %v4637_v1 = vadd.f32 1.0, %v3884_v48  ;;  %vm4649_vm3 = vmor %vm1111_vm11, %vm1112_vm15  ;;  %v3254_v48 = vld [vmem:[%s5568_s13 + $0x260] sm:$0xf] }
 0x409   :  { %v1196_v58 = vmul.f32 %v1089_v37, %v4491_v12  ;;  %v1134_v40 = vsel %vm4592_vm5, %v1133_v34, %v1129_v46  ;;  %v1094_v47 = vmul.f32 %v3878_v29, %v1093_v43  ;;  %v3886_v54 = vpop.eup %3885  ;;  %v1145_v12 = vand.u32 2147483647, %v4588_v16  ;;  %v3672_v43 = vld [vmem:[%s5568_s13 + $0x4c] sm:$0xf0]  ;;  %v3366_v37 = vld [vmem:[%s5568_s13 + $0x340] sm:$0xf] }
 0x40a   :  { %v1199_v50 = vmul.f32 %v1134_v40, %v4493_v14  ;;  %v1109_v52 = vmul.f32 %v4598_v32, %v1108_v9  ;;  %v1138_v62 = vsub.f32 1.0, %v1137_v53  ;;  %v1182_v14 = vmul.f32 %v3886_v54, %v4590_v21  ;;  %v3768_v9 = vld [vmem:[%s5568_s13 + $0x34c] sm:$0xf0] }
 0x40b   :  { %v1204_v55 = vrot.slane %v1196_v58, 4  ;;  %v1095_v56 = vadd.f32 %v3878_v29, %v1094_v47  ;;  %vm1142_vm0 = vweird.f32 %v3882_v18  ;;  %vm4643_vm2 = vcmp.eq.f32.partialorder %v1145_v12, 8.507059e+37 }
 0x40c   :  { %v1222_v59 = vrot.slane %v1199_v50, 4  ;;  %v1110_v3 = vadd.f32 %v4598_v32, %v1109_v52  ;;  %v1139_v5 = vmul.f32 %v3882_v18, %v1138_v62  ;;  %v1183_v7 = vsub.f32 1.0, %v1182_v14  ;;  %vm1143_vm4 = vmor %vm1141_vm1, %vm1142_vm0  ;;  %v3668_v52 = vld [vmem:[%s5568_s13 + $0x2c] sm:$0xf0]  ;;  %v3110_v62 = vld [vmem:[%s5568_s13 + $0x140] sm:$0xf] }
 0x40d   :  { %v1099_v63 = vsel %vm1098_vm14, %v3878_v29, %v1095_v56  ;;  %v1205_v2 = vadd.f32 %v1204_v55, %v1196_v58  ;;  %3887 = vrcp.f32 %v4637_v1  ;;  %v1148_v13 = vor.u32 1.1754944e-38, %v1147_v0  ;;  %v3708_v58 = vld [vmem:[%s5568_s13 + $0x16c] sm:$0xf0] }
 0x40e   :  { %v1104_v44 = vsel %vm4619_vm12, %v1103_v51, %v1099_v63  ;;  %v1223_v8 = vadd.f32 %v1222_v59, %v1199_v50  ;;  %v1140_v4 = vadd.f32 %v3882_v18, %v1139_v5  ;;  %v1184_v15 = vmul.f32 %v3886_v54, %v1183_v7  ;;  %v3740_v50 = vld [vmem:[%s5568_s13 + $0x26c] sm:$0xf0]  ;;  %v2966_v51 = vld [vmem:[%s5568_s13 + $0x20] sm:$0xf] }
 0x40f   :  { %vm1187_vm5 = vweird.f32 %v3886_v54  ;;  %v1190_v16 = vand.u32 2147483647, %v4590_v21  ;;  %v1206_v17 = vrot.slane %v1205_v2, 2  ;;  %v1197_v19 = vmul.f32 %v1104_v44, %v4499_v20  ;;  %v3704_v14 = vld [vmem:[%s5568_s13 + $0x14c] sm:$0xf0] }
 0x410   :  { %v1114_v61 = vsel %vm4649_vm3, %v4598_v32, %v1110_v3  ;;  %v1144_v23 = vsel %vm1143_vm4, %v3882_v18, %v1140_v4  ;;  %v1185_v27 = vadd.f32 %v3886_v54, %v1184_v15  ;;  %v1224_v29 = vrot.slane %v1223_v8, 2  ;;  %vm1188_vm9 = vmor %vm1186_vm6, %vm1187_vm5  ;;  %v3126_v18 = vld [vmem:[%s5568_s13 + $0x160] sm:$0xf]  ;;  %v3736_v44 = vld [vmem:[%s5568_s13 + $0x24c] sm:$0xf0] }
 0x411   :  { %v1149_v26 = vsel %vm4643_vm2, %v1148_v13, %v1144_v23  ;;  %vm1116_vm7 = vcmp.eq.f32.partialorder %v1115_v57, 8.507059e+37  ;;  %vm1191_vm10 = vcmp.eq.f32.partialorder %v1190_v16, 8.507059e+37  ;;  %v2946_v34 = vmul.f32 -1.442695, %v4610_v41  ;;  %v3350_v57 = vld [vmem:[%s5568_s13 + $0x320] sm:$0xf] }
 0x412   :  { %v1200_v30 = vmul.f32 %v1149_v26, %v4506_v25  ;;  %v1119_v33 = vsel %vm1116_vm7, %v1118_v24, %v1114_v61  ;;  %v1189_v20 = vsel %vm1188_vm9, %v3886_v54, %v1185_v27  ;;  %v4667_v35 = vadd.f32 %v1206_v17, %v1205_v2  ;;  %v2982_v25 = vld [vmem:[%s5568_s13 + $0x40] sm:$0xf]  ;;  %v4755_v15 = vld [vmem:[%s5568_s13 + $0x30c] sm:$0xf0]  ;;  %v3690_v24 = vld [vmem:[%s5568_s13 + $0xe4] sm:$0xf] }
 0x413   :  { %v4665_v32 = vpop.eup %3887  ;;  %v1210_v36 = vrot.slane %v1197_v19, 4  ;;  %v1194_v39 = vsel %vm1191_vm10, %v1193_v31, %v1189_v20  ;;  %v4681_v46 = vadd.f32 %v1224_v29, %v1223_v8  ;;  %v4684_v49 = vmul.f32 %v1119_v33, %v4503_v22  ;;  %v3238_v5 = vld [vmem:[%s5568_s13 + $0x240] sm:$0xf]  ;;  %v3064_v26 = vld [vmem:[%s5568_s13 + $0xf0] sm:$0xf0] }
 0x414   :  { %v1228_v38 = vrot.slane %v1200_v30, 4  ;;  %v1203_v21 = vmul.f32 %v1194_v39, %v4509_v28  ;;  %v1152_v42 = vmul.f32 %v4665_v32, %v4637_v1  ;;  %vm1156_vm11 = vweird.f32 %v4637_v1  ;;  %v4740_v4 = vld [vmem:[%s5568_s13] sm:$0xf]  ;;  %v3786_v31 = vld [vmem:[%s5568_s13 + $0x3e4] sm:$0xf] }
 0x415   :  { %v1160_v22 = vand.u32 2147483647, %v4637_v1  ;;  %v1208_v53 = vrot.slane %v4667_v35, 1  ;;  %v1211_v54 = vadd.f32 %v1210_v36, %v1197_v19  ;;  %v1162_v56 = vand.u32 2147483648, %v4637_v1  ;;  %v4750_v13 = vld [vmem:[%s5568_s13 + $0x300] sm:$0xf] }
 0x416   :  { %v1229_v28 = vadd.f32 %v1228_v38, %v1200_v30  ;;  %v1246_v40 = vrot.slane %v1203_v21, 4  ;;  %v1153_v47 = vsub.f32 1.0, %v1152_v42  ;;  %vm1157_vm12 = vweird.f32 %v4665_v32  ;;  %v3448_v33 = vld [vmem:[%s5568_s13 + $0x3f0] sm:$0xf0]  ;;  %v3094_v38 = vld [vmem:[%s5568_s13 + $0x120] sm:$0xf] }
 0x417   :  { %3889 = vpow2.f32 %v2946_v34  ;;  %v1226_v63 = vrot.slane %v4681_v46, 1  ;;  %v2983_v2 = vor.u32 %v3672_v43, %v2982_v25  ;;  %v3367_v3 = vor.u32 %v3768_v9, %v3366_v37  ;;  %vm4761_vm14 = vmor %vm1156_vm11, %vm1157_vm12  ;;  %v3700_v39 = vld [vmem:[%s5568_s13 + $0x12c] sm:$0xf0]  ;;  %v3222_v37 = vld [vmem:[%s5568_s13 + $0x220] sm:$0xf] }
 0x418   :  { %v1230_v55 = vrot.slane %v1229_v28, 2  ;;  %v1247_v12 = vadd.f32 %v1246_v40, %v1203_v21  ;;  %v1154_v59 = vmul.f32 %v4665_v32, %v1153_v47  ;;  %vm4733_vm13 = vcmp.eq.f32.partialorder %v1160_v22, 8.507059e+37  ;;  %v3048_v40 = vld [vmem:[%s5568_s13 + $0xd0] sm:$0xf0] }
 0x419   :  { %v3127_v10 = vor.u32 %v3708_v58, %v3126_v18  ;;  %v1212_v16 = vrot.slane %v1211_v54, 2  ;;  %v1163_v19 = vor.u32 1.1754944e-38, %v1162_v56  ;;  %2071 = vmatpush.bf16.msra.mxu1 %v2983_v2  ;;  %2110 = vmatpush.bf16.msrb.mxu0 %v3367_v3  ;;  %v3255_v61 = vor.u32 %v3740_v50, %v3254_v48  ;;  %v3686_v58 = vld [vmem:[%s5568_s13 + $0xc4] sm:$0xf]  ;;  %v3696_v56 = vld [vmem:[%s5568_s13 + $0x10c] sm:$0xf0] }
 0x41a   :  { %v1231_v0 = vadd.f32 %v1230_v55, %v1229_v28  ;;  %v1248_v6 = vrot.slane %v1247_v12, 2  ;;  %v1155_v7 = vadd.f32 %v4665_v32, %v1154_v59  ;;  %v2967_v23 = vor.u32 %v3668_v52, %v2966_v51  ;;  %v3732_v28 = vld [vmem:[%s5568_s13 + $0x22c] sm:$0xf0]  ;;  %v3782_v51 = vld [vmem:[%s5568_s13 + $0x3c4] sm:$0xf] }
 0x41b   :  { %2083 = vmatpush.bf16.msra.mxu2 %v3127_v10  ;;  %v3351_v30 = vor.u32 %v3764_v60, %v3350_v57  ;;  %v4781_v20 = vadd.f32 %v1208_v53, %v4667_v35  ;;  %v1216_v34 = vrot.slane %v4684_v49, 4  ;;  %2096 = vmatpush.bf16.msra.mxu3 %v3255_v61  ;;  %v4793_v42 = vadd.f32 %v1226_v63, %v4681_v46  ;;  %v3432_v52 = vld [vmem:[%s5568_s13 + $0x3d0] sm:$0xf0]  ;;  %v3078_v55 = vld [vmem:[%s5568_s13 + $0x100] sm:$0xf] }
 0x41c   :  { %v1232_v27 = vrot.slane %v1231_v0, 1  ;;  %v1249_v29 = vadd.f32 %v1248_v6, %v1247_v12  ;;  %v1159_v1 = vsel %vm4761_vm14, %v4665_v32, %v1155_v7  ;;  %v3111_v32 = vor.u32 %v3704_v14, %v3110_v62  ;;  %v3206_v57 = vld [vmem:[%s5568_s13 + $0x200] sm:$0xf]  ;;  %v3728_v62 = vld [vmem:[%s5568_s13 + $0x20c] sm:$0xf0] }
 0x41d   :  { %v1164_v36 = vsel %vm4733_vm13, %v1163_v19, %v1159_v1  ;;  %v3890_v21 = vpop.eup %3889  ;;  %v3239_v43 = vor.u32 %v3736_v44, %v3238_v5  ;;  %v1213_v9 = vadd.f32 %v1212_v16, %v1211_v54  ;;  %2072 = vmatpush.bf16.msra.mxu1 %v2967_v23  ;;  %2111 = vmatpush.bf16.msrb.mxu0 %v3351_v30  ;;  %v3722_v14 = vld [vmem:[%s5568_s13 + $0x1e4] sm:$0xf]  ;;  %v3192_v63 = vld [vmem:[%s5568_s13 + $0x1f0] sm:$0xf0] }
 0x41e   :  { %v1250_v35 = vrot.slane %v1249_v29, 1  ;;  %v1201_v25 = vmul.f32 %v1164_v36, %v4560_v45  ;;  %v4802_v18 = vadd.f32 1.0, %v3890_v21  ;;  %v2951_v46 = vor.u32 %v4745_v11, %v4740_v4  ;;  %v3754_v3 = vld [vmem:[%s5568_s13 + $0x2e4] sm:$0xf]  ;;  %v3320_v5 = vld [vmem:[%s5568_s13 + $0x2f0] sm:$0xf0] }
 0x41f   :  { %v3335_v45 = vor.u32 %v4755_v15, %v4750_v13  ;;  %v4814_v47 = vadd.f32 %v1232_v27, %v1231_v0  ;;  %2084 = vmatpush.bf16.msra.mxu2 %v3111_v32  ;;  %v3067_v48 = vor.u32 %v3690_v24, %v3064_v26  ;;  %v3451_v50 = vor.u32 %v3786_v31, %v3448_v33  ;;  %v3682_v10 = vld [vmem:[%s5568_s13 + $0xa4] sm:$0xf]  ;;  %v3032_v15 = vld [vmem:[%s5568_s13 + $0xb0] sm:$0xf0] }
 0x420   :  { %v1234_v22 = vrot.slane %v1201_v25, 4  ;;  %v1251_v53 = vadd.f32 %v1250_v35, %v1249_v29  ;;  %3891 = vrcp.f32 %v4802_v18  ;;  %2097 = vmatpush.bf16.msra.mxu3 %v3239_v43  ;;  %v3095_v54 = vor.u32 %v3700_v39, %v3094_v38  ;;  %v3778_v16 = vld [vmem:[%s5568_s13 + $0x3a4] sm:$0xf]  ;;  %v3416_v17 = vld [vmem:[%s5568_s13 + $0x3b0] sm:$0xf0] }
 0x421   :  { %v4833_v12 = vadd.f32 %v1216_v34, %v4684_v49  ;;  %v3223_v60 = vor.u32 %v3732_v28, %v3222_v37  ;;  %v1252_v0 = vpack.c.bf16 %v4781_v20, %v4781_v20  ;;  %v1255_v49 = vpack.c.bf16 %v4793_v42, %v4793_v42  ;;  %2073 = vmatpush.bf16.msra.mxu1 %v2951_v46  ;;  %v3718_v26 = vld [vmem:[%s5568_s13 + $0x1c4] sm:$0xf]  ;;  %v3176_v27 = vld [vmem:[%s5568_s13 + $0x1d0] sm:$0xf0] }
 0x422   :  { %v1235_v59 = vadd.f32 %v1234_v22, %v1201_v25  ;;  %v1214_v2 = vrot.slane %v1213_v9, 1  ;;  %2112 = vmatpush.bf16.msrb.mxu0 %v3335_v45  ;;  %v1256_v44 = vpack.c.bf16 %v4814_v47, %v4814_v47  ;;  %v3051_v7 = vor.u32 %v3686_v58, %v3048_v40  ;;  %v3750_v30 = vld [vmem:[%s5568_s13 + $0x2c4] sm:$0xf]  ;;  %v3304_v31 = vld [vmem:[%s5568_s13 + $0x2d0] sm:$0xf0] }
 0x423   :  { %v3435_v8 = vor.u32 %v3782_v51, %v3432_v52  ;;  %v1259_v4 = vpack.c.bf16 %v1251_v53, %v1251_v53  ;;  %2085 = vmatpush.bf16.msra.mxu2 %v3095_v54  ;;  %v3079_v11 = vor.u32 %v3696_v56, %v3078_v55  ;;  %v3207_v13 = vor.u32 %v3728_v62, %v3206_v57  ;;  %v3678_v33 = vld [vmem:[%s5568_s13 + $0x84] sm:$0xf]  ;;  %v3016_v38 = vld [vmem:[%s5568_s13 + $0x90] sm:$0xf0] }
 0x424   :  { %v1236_v6 = vrot.slane %v1235_v59, 2  ;;  %2098 = vmatpush.bf16.msra.mxu3 %v3223_v60  ;;  %v1218_v19 = vrot.slane %v4833_v12, 2  ;;  %v3195_v23 = vor.u32 %v3722_v14, %v3192_v63  ;;  %v3323_v24 = vor.u32 %v3754_v3, %v3320_v5  ;;  %v3774_v39 = vld [vmem:[%s5568_s13 + $0x384] sm:$0xf]  ;;  %v3400_v43 = vld [vmem:[%s5568_s13 + $0x390] sm:$0xf0] }
 0x425   :  { %2118 = vmatpush.bf16.msrb.mxu1 %v3067_v48  ;;  %v1215_v1 = vadd.f32 %v1214_v2, %v1213_v9  ;;  %v3035_v36 = vor.u32 %v3682_v10, %v3032_v15  ;;  %v3419_v32 = vor.u32 %v3778_v16, %v3416_v17  ;;  %v1406_v21 = vunpack.c.l.b16 %v1252_v0  ;;  %v3714_v37 = vld [vmem:[%s5568_s13 + $0x1a4] sm:$0xf]  ;;  %v3160_v28 = vld [vmem:[%s5568_s13 + $0x1b0] sm:$0xf0] }
 0x426   :  { %2157 = vmatpush.bf16.msra.mxu0 %v3451_v50  ;;  %v1237_v61 = vadd.f32 %v1236_v6, %v1235_v59  ;;  %v4875_v29 = vpop.eup %3891  ;;  %v1409_v42 = vunpack.c.l.b16 %v1255_v49  ;;  %v1410_v35 = vunpack.c.l.b16 %v1256_v44  ;;  %v1413_v25 = vunpack.c.l.b16 %v1259_v4  ;;  %v3746_v40 = vld [vmem:[%s5568_s13 + $0x2a4] sm:$0xf]  ;;  %v3288_v47 = vld [vmem:[%s5568_s13 + $0x2b0] sm:$0xf0] }
 0x427   :  { %v1167_v34 = vmul.f32 %v4875_v29, %v4802_v18  ;;  %2086 = vmatpush.bf16.msra.mxu2 %v3079_v11  ;;  %v3179_v45 = vor.u32 %v3718_v26, %v3176_v27  ;;  %v3307_v58 = vor.u32 %v3750_v30, %v3304_v31  ;;  %v1253_v22 = vpack.c.bf16 %v1215_v1, %v1215_v1  ;;  %v3674_v55 = vld [vmem:[%s5568_s13 + $0x64] sm:$0xf]  ;;  %v3000_v59 = vld [vmem:[%s5568_s13 + $0x70] sm:$0xf0] }
 0x428   :  { %v1238_v20 = vrot.slane %v1237_v61, 1  ;;  %2099 = vmatpush.bf16.msra.mxu3 %v3207_v13  ;;  %v1175_v48 = vand.u32 2147483647, %v4802_v18  ;;  %v1177_v50 = vand.u32 2147483648, %v4802_v18  ;;  %v3019_v51 = vor.u32 %v3678_v33, %v3016_v38  ;;  %v3770_v60 = vld [vmem:[%s5568_s13 + $0x364] sm:$0xf] }
 0x429   :  { %2119 = vmatpush.bf16.msrb.mxu1 %v3051_v7  ;;  %v1168_v46 = vsub.f32 1.0, %v1167_v34  ;;  %vm1172_vm15 = vweird.f32 %v4875_v29  ;;  %v3403_v54 = vor.u32 %v3774_v39, %v3400_v43  ;;  %vm1171_vm0 = vweird.f32 %v4802_v18  ;;  %v3384_v62 = vld [vmem:[%s5568_s13 + $0x370] sm:$0xf0]  ;;  %v3710_v49 = vld [vmem:[%s5568_s13 + $0x184] sm:$0xf] }
 0x42a   :  { %2158 = vmatpush.bf16.msra.mxu0 %v3435_v8  ;;  %v1239_v9 = vadd.f32 %v1238_v20, %v1237_v61  ;;  %v3163_v56 = vor.u32 %v3714_v37, %v3160_v28  ;;  %v3291_v57 = vor.u32 %v3746_v40, %v3288_v47  ;;  %v1414_v14 = vsel %vm506_vm8, %v1410_v35, %v1406_v21  ;;  %v3144_v2 = vld [vmem:[%s5568_s13 + $0x190] sm:$0xf0]  ;;  %vm1173_vm1 = vmor %vm1171_vm0, %vm1172_vm15  ;;  %v3742_v8 = vld [vmem:[%s5568_s13 + $0x284] sm:$0xf] }
 0x42b   :  { %2131 = vmatpush.bf16.msrb.mxu2 %v3195_v23  ;;  %v1169_v53 = vmul.f32 %v4875_v29, %v1168_v46  ;;  %v4934_v3 = vpack.c.b16 %v1414_v14, %v1414_v14  ;;  %v1417_v5 = vsel %vm506_vm8, %v1413_v25, %v1409_v42  ;;  %v1407_v44 = vunpack.c.l.b16 %v1253_v22  ;;  %v3272_v10 = vld [vmem:[%s5568_s13 + $0x290] sm:$0xf0]  ;;  %v3670_v18 = vld [vmem:[%s5568_s13 + $0x44] sm:$0xf] }
 0x42c   :  { %2144 = vmatpush.bf16.msrb.mxu3 %v3323_v24  ;;  %v1257_v52 = vpack.c.bf16 %v1239_v9, %v1239_v9  ;;  %v1219_v6 = vadd.f32 %v1218_v19, %v4833_v12  ;;  %v1178_v7 = vor.u32 1.1754944e-38, %v1177_v50  ;;  %v4950_v4 = vpack.c.b16 %v1417_v5, %v1417_v5  ;;  %v2984_v17 = vld [vmem:[%s5568_s13 + $0x50] sm:$0xf0]  ;;  %v3766_v19 = vld [vmem:[%s5568_s13 + $0x344] sm:$0xf] }
 0x42d   :  { %2120 = vmatpush.bf16.msrb.mxu1 %v3035_v36  ;;  %v1170_v0 = vadd.f32 %v4875_v29, %v1169_v53  ;;  %vm1176_vm2 = vcmp.eq.f32.partialorder %v1175_v48, 8.507059e+37  ;;  %v3003_v12 = vor.u32 %v3674_v55, %v3000_v59  ;;  %v3387_v13 = vor.u32 %v3770_v60, %v3384_v62  ;;  %v3368_v61 = vld [vmem:[%s5568_s13 + $0x350] sm:$0xf0]  ;;  %v3706_v26 = vld [vmem:[%s5568_s13 + $0x164] sm:$0xf] }
 0x42e   :  { %2159 = vmatpush.bf16.msra.mxu0 %v3419_v32  ;;  %v1411_v63 = vunpack.c.l.b16 %v1257_v52  ;;  %v3147_v16 = vor.u32 %v3710_v49, %v3144_v2  ;;  %2074 = vmatmul.bf16.vlgmr.msra.gmra.mxu1 %v4934_v3  ;;  %v3275_v24 = vor.u32 %v3742_v8, %v3272_v10  ;;  %v3738_v1 = vld [vmem:[%s5568_s13 + $0x264] sm:$0xf]  ;;  %v1220_v31 = vrot.slane %v1219_v6, 1  ;;  %v2968_v32 = vld [vmem:[%s5568_s13 + $0x30] sm:$0xf0] }
 0x42f   :  { %2132 = vmatpush.bf16.msrb.mxu2 %v3179_v45  ;;  %v1174_v11 = vsel %vm1173_vm1, %v4875_v29, %v1170_v0  ;;  %2113 = vmatmul.bf16.vlgmr.msrb.gmra.mxu0 %v4950_v4  ;;  %v3128_v29 = vld [vmem:[%s5568_s13 + $0x170] sm:$0xf0]  ;;  %v2987_v20 = vor.u32 %v3670_v18, %v2984_v17  ;;  %v3371_v34 = vor.u32 %v3766_v19, %v3368_v61  ;;  %v3666_v36 = vld [vmem:[%s5568_s13 + $0x24] sm:$0xf]  ;;  %v3070_v50 = vld [vmem:[%s5568_s13 + $0xe8] sm:$0xf] }
 0x430   :  { %2145 = vmatpush.bf16.msrb.mxu3 %v3307_v58  ;;  %v1179_v15 = vsel %vm1176_vm2, %v1178_v7, %v1174_v11  ;;  %v1415_v27 = vsel %vm506_vm8, %v1411_v63, %v1407_v44  ;;  %v3762_v38 = vld [vmem:[%s5568_s13 + $0x324] sm:$0xf]  ;;  %v3352_v39 = vld [vmem:[%s5568_s13 + $0x330] sm:$0xf0]  ;;  %v3131_v42 = vor.u32 %v3706_v26, %v3128_v29  ;;  %v2971_v45 = vor.u32 %v3666_v36, %v2968_v32  ;;  %v3454_v55 = vld [vmem:[%s5568_s13 + $0x3e8] sm:$0xf] }
 0x431   :  { %2121 = vmatpush.bf16.msrb.mxu1 %v3019_v51  ;;  %v1202_v23 = vmul.f32 %v1179_v15, %v4610_v41  ;;  %v3256_v41 = vld [vmem:[%s5568_s13 + $0x270] sm:$0xf0]  ;;  %v4981_v30 = vpack.c.b16 %v1415_v27, %v1415_v27  ;;  %v3702_v25 = vld [vmem:[%s5568_s13 + $0x144] sm:$0xf]  ;;  %v3355_v58 = vor.u32 %v3762_v38, %v3352_v39  ;;  %v1221_v22 = vadd.f32 %v1220_v31, %v1219_v6  ;;  %v3693_v51 = vld [vmem:[%s5568_s13 + $0xf4] sm:$0xf0] }
 0x432   :  { %2160 = vmatpush.bf16.msra.mxu0 %v3403_v54  ;;  %v3259_v35 = vor.u32 %v3738_v1, %v3256_v41  ;;  %v3112_v43 = vld [vmem:[%s5568_s13 + $0x150] sm:$0xf0]  ;;  %v3734_v37 = vld [vmem:[%s5568_s13 + $0x244] sm:$0xf]  ;;  %v3071_v2 = vor.u32 %v3693_v51, %v3070_v50  ;;  %v3054_v44 = vld [vmem:[%s5568_s13 + $0xc8] sm:$0xf] }
 0x433   :  { %2133 = vmatpush.bf16.msrb.mxu2 %v3163_v56  ;;  %v1240_v33 = vrot.slane %v1202_v23, 4  ;;  %v3240_v28 = vld [vmem:[%s5568_s13 + $0x250] sm:$0xf0]  ;;  %v3662_v9 = vld [vmem:[%s5568_s13 + $0x4] sm:$0xf]  ;;  %v3115_v53 = vor.u32 %v3702_v25, %v3112_v43  ;;  %v1254_v49 = vpack.c.bf16 %v1221_v22, %v1221_v22 }
 0x434   :  { %2146 = vmatpush.bf16.msrb.mxu3 %v3291_v57  ;;  %2087 = vmatmul.bf16.vlgmr.msra.gmra.mxu2 %v4981_v30  ;;  %v2952_v40 = vld [vmem:[%s5568_s13 + $0x10] sm:$0xf0]  ;;  %v3758_v47 = vld [vmem:[%s5568_s13 + $0x304] sm:$0xf]  ;;  %v3243_v54 = vor.u32 %v3734_v37, %v3240_v28  ;;  %v3789_v56 = vld [vmem:[%s5568_s13 + $0x3f4] sm:$0xf0] }
 0x435   :  { %2122 = vmatpush.bf16.msrb.mxu1 %v3003_v12  ;;  %v1241_v21 = vadd.f32 %v1240_v33, %v1202_v23  ;;  %v3336_v48 = vld [vmem:[%s5568_s13 + $0x310] sm:$0xf0]  ;;  %v3698_v57 = vld [vmem:[%s5568_s13 + $0x124] sm:$0xf]  ;;  %v2955_v63 = vor.u32 %v3662_v9, %v2952_v40  ;;  %v3455_v5 = vor.u32 %v3789_v56, %v3454_v55  ;;  %v3689_v6 = vld [vmem:[%s5568_s13 + $0xd4] sm:$0xf0]  ;;  %v1408_v1 = vunpack.c.l.b16 %v1254_v49 }
 0x436   :  { %2161 = vmatpush.bf16.msra.mxu0 %v3387_v13  ;;  %v3096_v59 = vld [vmem:[%s5568_s13 + $0x130] sm:$0xf0]  ;;  %v3730_v60 = vld [vmem:[%s5568_s13 + $0x224] sm:$0xf]  ;;  %v3339_v0 = vor.u32 %v3758_v47, %v3336_v48  ;;  %v3438_v11 = vld [vmem:[%s5568_s13 + $0x3c8] sm:$0xf]  ;;  %v3055_v23 = vor.u32 %v3689_v6, %v3054_v44 }
 0x437   :  { %2134 = vmatpush.bf16.msrb.mxu2 %v3147_v16  ;;  %v1242_v46 = vrot.slane %v1241_v21, 2  ;;  %v3224_v62 = vld [vmem:[%s5568_s13 + $0x230] sm:$0xf0]  ;;  %v3099_v8 = vor.u32 %v3698_v57, %v3096_v59  ;;  %v3785_v12 = vld [vmem:[%s5568_s13 + $0x3d4] sm:$0xf0] }
 0x438   :  { %2147 = vmatpush.bf16.msrb.mxu3 %v3275_v24  ;;  %v3227_v10 = vor.u32 %v3730_v60, %v3224_v62  ;;  %v3694_v13 = vld [vmem:[%s5568_s13 + $0x104] sm:$0xf]  ;;  %v3080_v18 = vld [vmem:[%s5568_s13 + $0x110] sm:$0xf0]  ;;  %v3198_v19 = vld [vmem:[%s5568_s13 + $0x1e8] sm:$0xf]  ;;  %v3439_v24 = vor.u32 %v3785_v12, %v3438_v11 }
 0x439   :  { %2123 = vmatpush.bf16.msrb.mxu1 %v2987_v20  ;;  %v1243_v52 = vadd.f32 %v1242_v46, %v1241_v21  ;;  %v3726_v15 = vld [vmem:[%s5568_s13 + $0x204] sm:$0xf]  ;;  %v3208_v16 = vld [vmem:[%s5568_s13 + $0x210] sm:$0xf0]  ;;  %v3725_v61 = vld [vmem:[%s5568_s13 + $0x1f4] sm:$0xf0]  ;;  %v3083_v31 = vor.u32 %v3694_v13, %v3080_v18 }
 0x43a   :  { %2162 = vmatpush.bf16.msra.mxu0 %v3371_v34  ;;  %v3326_v26 = vld [vmem:[%s5568_s13 + $0x2e8] sm:$0xf]  ;;  %v3757_v27 = vld [vmem:[%s5568_s13 + $0x2f4] sm:$0xf0]  ;;  %v3211_v33 = vor.u32 %v3726_v15, %v3208_v16  ;;  %v3199_v32 = vor.u32 %v3725_v61, %v3198_v19 }
 0x43b   :  { %2135 = vmatpush.bf16.msrb.mxu2 %v3131_v42  ;;  %v1244_v14 = vrot.slane %v1243_v52, 1  ;;  %v3038_v29 = vld [vmem:[%s5568_s13 + $0xa8] sm:$0xf]  ;;  %v3685_v20 = vld [vmem:[%s5568_s13 + $0xb4] sm:$0xf0]  ;;  %v3327_v39 = vor.u32 %v3757_v27, %v3326_v26 }
 0x43c   :  { %2148 = vmatpush.bf16.msrb.mxu3 %v3259_v35  ;;  %v3422_v34 = vld [vmem:[%s5568_s13 + $0x3a8] sm:$0xf]  ;;  %v3781_v36 = vld [vmem:[%s5568_s13 + $0x3b4] sm:$0xf0]  ;;  %v3039_v25 = vor.u32 %v3685_v20, %v3038_v29 }
 0x43d   :  { %2124 = vmatpush.bf16.msrb.mxu1 %v2971_v45  ;;  %v1245_v7 = vadd.f32 %v1244_v14, %v1243_v52  ;;  %v3182_v21 = vld [vmem:[%s5568_s13 + $0x1c8] sm:$0xf]  ;;  %v3721_v42 = vld [vmem:[%s5568_s13 + $0x1d4] sm:$0xf0]  ;;  %v3423_v43 = vor.u32 %v3781_v36, %v3422_v34 }
 0x43e   :  { %2163 = vmatpush.bf16.msra.mxu0 %v3355_v58  ;;  %v3310_v37 = vld [vmem:[%s5568_s13 + $0x2c8] sm:$0xf]  ;;  %v3753_v28 = vld [vmem:[%s5568_s13 + $0x2d4] sm:$0xf0]  ;;  %v3183_v40 = vor.u32 %v3721_v42, %v3182_v21  ;;  %v3072_v21 = vld [vmem:[%s5568_s13 + $0xf8] sm:$0xf0] }
 0x43f   :  { %2136 = vmatpush.bf16.msrb.mxu2 %v3115_v53  ;;  %v1258_v17 = vpack.c.bf16 %v1245_v7, %v1245_v7  ;;  %v3022_v9 = vld [vmem:[%s5568_s13 + $0x88] sm:$0xf]  ;;  %v3681_v46 = vld [vmem:[%s5568_s13 + $0x94] sm:$0xf0]  ;;  %v3311_v47 = vor.u32 %v3753_v28, %v3310_v37  ;;  %v3787_v42 = vld [vmem:[%s5568_s13 + $0x3ec] sm:$0xf] }
 0x440   :  { %2149 = vmatpush.bf16.msrb.mxu3 %v3243_v54  ;;  %v3406_v45 = vld [vmem:[%s5568_s13 + $0x388] sm:$0xf]  ;;  %v3777_v58 = vld [vmem:[%s5568_s13 + $0x394] sm:$0xf0]  ;;  %v3023_v50 = vor.u32 %v3681_v46, %v3022_v9 }
 0x441   :  { %2125 = vmatpush.bf16.msrb.mxu1 %v2955_v63  ;;  %v1412_v41 = vunpack.c.l.b16 %v1258_v17  ;;  %v3166_v22 = vld [vmem:[%s5568_s13 + $0x1a8] sm:$0xf]  ;;  %v3717_v48 = vld [vmem:[%s5568_s13 + $0x1b4] sm:$0xf0]  ;;  %v3407_v51 = vor.u32 %v3777_v58, %v3406_v45 }
 0x442   :  { %2164 = vmatpush.bf16.msra.mxu0 %v3339_v0  ;;  %v3294_v52 = vld [vmem:[%s5568_s13 + $0x2a8] sm:$0xf]  ;;  %v3749_v53 = vld [vmem:[%s5568_s13 + $0x2b4] sm:$0xf0]  ;;  %v3167_v59 = vor.u32 %v3717_v48, %v3166_v22  ;;  %v3687_v22 = vld [vmem:[%s5568_s13 + $0xcc] sm:$0xf] }
 0x443   :  { %2137 = vmatpush.bf16.msrb.mxu2 %v3099_v8  ;;  %v1416_v38 = vsel %vm506_vm8, %v1412_v41, %v1408_v1  ;;  %v3006_v54 = vld [vmem:[%s5568_s13 + $0x68] sm:$0xf]  ;;  %v3677_v55 = vld [vmem:[%s5568_s13 + $0x74] sm:$0xf0]  ;;  %v3295_v60 = vor.u32 %v3749_v53, %v3294_v52  ;;  %v3440_v52 = vld [vmem:[%s5568_s13 + $0x3d8] sm:$0xf0] }
 0x444   :  { %2150 = vmatpush.bf16.msrb.mxu3 %v3227_v10  ;;  %2126 = vmatmul.bf16.vlgmr.msrb.gmra.mxu1 %v4934_v3  ;;  %v5101_v35 = vpack.c.b16 %v1416_v38, %v1416_v38  ;;  %v3390_v56 = vld [vmem:[%s5568_s13 + $0x368] sm:$0xf]  ;;  %v3773_v57 = vld [vmem:[%s5568_s13 + $0x374] sm:$0xf0]  ;;  %v3007_v63 = vor.u32 %v3677_v55, %v3006_v54  ;;  %v3691_v38 = vld [vmem:[%s5568_s13 + $0xec] sm:$0xf] }
 0x445   :  { %2170 = vmatpush.bf16.msra.mxu1 %v3071_v2  ;;  %2165 = vmatmul.bf16.vlgmr.msra.gmra.mxu0 %v4950_v4  ;;  %v3150_v62 = vld [vmem:[%s5568_s13 + $0x188] sm:$0xf]  ;;  %v3713_v14 = vld [vmem:[%s5568_s13 + $0x194] sm:$0xf0]  ;;  %v3391_v0 = vor.u32 %v3773_v57, %v3390_v56  ;;  %vm2594_vm8 = vcmask 1041408  }
 0x446   :  { %2209 = vmatpush.bf16.msrb.mxu0 %v3455_v5  ;;  %2100 = vmatmul.bf16.vlgmr.msra.gmra.mxu3 %v5101_v35  ;;  %v3278_v49 = vld [vmem:[%s5568_s13 + $0x288] sm:$0xf]  ;;  %v3745_v2 = vld [vmem:[%s5568_s13 + $0x294] sm:$0xf0]  ;;  %v3151_v8 = vor.u32 %v3713_v14, %v3150_v62 }
 0x447   :  { %2138 = vmatpush.bf16.msrb.mxu2 %v3083_v31  ;;  %v2990_v5 = vld [vmem:[%s5568_s13 + $0x48] sm:$0xf]  ;;  %v3673_v44 = vld [vmem:[%s5568_s13 + $0x54] sm:$0xf0]  ;;  %v3279_v10 = vor.u32 %v3745_v2, %v3278_v49  ;;  %v3683_v49 = vld [vmem:[%s5568_s13 + $0xac] sm:$0xf] }
 0x448   :  { %2151 = vmatpush.bf16.msrb.mxu3 %v3211_v33  ;;  %v3374_v6 = vld [vmem:[%s5568_s13 + $0x348] sm:$0xf]  ;;  %v3769_v7 = vld [vmem:[%s5568_s13 + $0x354] sm:$0xf0]  ;;  %v2991_v13 = vor.u32 %v3673_v44, %v2990_v5  ;;  %v3040_v5 = vld [vmem:[%s5568_s13 + $0xb8] sm:$0xf0] }
 0x449   :  { %2171 = vmatpush.bf16.msra.mxu1 %v3055_v23  ;;  %v3134_v11 = vld [vmem:[%s5568_s13 + $0x168] sm:$0xf]  ;;  %v3709_v12 = vld [vmem:[%s5568_s13 + $0x174] sm:$0xf0]  ;;  %v3375_v18 = vor.u32 %v3769_v7, %v3374_v6  ;;  %v3779_v44 = vld [vmem:[%s5568_s13 + $0x3ac] sm:$0xf] }
 0x44a   :  { %2210 = vmatpush.bf16.msrb.mxu0 %v3439_v24  ;;  %2139 = vmatmul.bf16.vlgmr.msrb.gmra.mxu2 %v4981_v30  ;;  %v3262_v15 = vld [vmem:[%s5568_s13 + $0x268] sm:$0xf]  ;;  %v3741_v16 = vld [vmem:[%s5568_s13 + $0x274] sm:$0xf0]  ;;  %v3135_v24 = vor.u32 %v3709_v12, %v3134_v11  ;;  %v3424_v6 = vld [vmem:[%s5568_s13 + $0x3b8] sm:$0xf0] }
 0x44b   :  { %2183 = vmatpush.bf16.msra.mxu2 %v3199_v32  ;;  %v2974_v17 = vld [vmem:[%s5568_s13 + $0x28] sm:$0xf]  ;;  %v3669_v19 = vld [vmem:[%s5568_s13 + $0x34] sm:$0xf0]  ;;  %v3263_v26 = vor.u32 %v3741_v16, %v3262_v15  ;;  %v3719_v11 = vld [vmem:[%s5568_s13 + $0x1cc] sm:$0xf] }
 0x44c   :  { %2196 = vmatpush.bf16.msra.mxu3 %v3327_v39  ;;  %v3358_v61 = vld [vmem:[%s5568_s13 + $0x328] sm:$0xf]  ;;  %v3765_v23 = vld [vmem:[%s5568_s13 + $0x334] sm:$0xf0]  ;;  %v2975_v41 = vor.u32 %v3669_v19, %v2974_v17  ;;  %v3184_v12 = vld [vmem:[%s5568_s13 + $0x1d8] sm:$0xf0] }
 0x44d   :  { %2172 = vmatpush.bf16.msra.mxu1 %v3039_v25  ;;  %v3118_v27 = vld [vmem:[%s5568_s13 + $0x148] sm:$0xf]  ;;  %v3705_v29 = vld [vmem:[%s5568_s13 + $0x154] sm:$0xf0]  ;;  %v3359_v31 = vor.u32 %v3765_v23, %v3358_v61  ;;  %v3456_v25 = vld [vmem:[%s5568_s13 + $0x3f8] sm:$0xf0] }
 0x44e   :  { %2211 = vmatpush.bf16.msrb.mxu0 %v3423_v43  ;;  %v3246_v1 = vld [vmem:[%s5568_s13 + $0x248] sm:$0xf]  ;;  %v3737_v33 = vld [vmem:[%s5568_s13 + $0x254] sm:$0xf0]  ;;  %v3119_v39 = vor.u32 %v3705_v29, %v3118_v27  ;;  %v3751_v15 = vld [vmem:[%s5568_s13 + $0x2cc] sm:$0xf] }
 0x44f   :  { %2184 = vmatpush.bf16.msra.mxu2 %v3183_v40  ;;  %v2958_v20 = vld [vmem:[%s5568_s13 + $0x8] sm:$0xf]  ;;  %v3665_v34 = vld [vmem:[%s5568_s13 + $0x14] sm:$0xf0]  ;;  %v3247_v43 = vor.u32 %v3737_v33, %v3246_v1  ;;  %v3075_v40 = vor.u32 %v3691_v38, %v3072_v21  ;;  %v3312_v16 = vld [vmem:[%s5568_s13 + $0x2d8] sm:$0xf0] }
 0x450   :  { %2197 = vmatpush.bf16.msra.mxu3 %v3311_v47  ;;  %v3342_v36 = vld [vmem:[%s5568_s13 + $0x308] sm:$0xf]  ;;  %v3761_v32 = vld [vmem:[%s5568_s13 + $0x314] sm:$0xf0]  ;;  %v2959_v9 = vor.u32 %v3665_v34, %v2958_v20  ;;  %v3459_v47 = vor.u32 %v3787_v42, %v3456_v25  ;;  %v3679_v17 = vld [vmem:[%s5568_s13 + $0x8c] sm:$0xf] }
 0x451   :  { %2173 = vmatpush.bf16.msra.mxu1 %v3023_v50  ;;  %v3102_v37 = vld [vmem:[%s5568_s13 + $0x128] sm:$0xf]  ;;  %v3701_v28 = vld [vmem:[%s5568_s13 + $0x134] sm:$0xf0]  ;;  %v3343_v46 = vor.u32 %v3761_v32, %v3342_v36  ;;  %v3056_v50 = vld [vmem:[%s5568_s13 + $0xd8] sm:$0xf0] }
 0x452   :  { %2212 = vmatpush.bf16.msrb.mxu0 %v3407_v51  ;;  %v3230_v45 = vld [vmem:[%s5568_s13 + $0x228] sm:$0xf]  ;;  %v3733_v58 = vld [vmem:[%s5568_s13 + $0x234] sm:$0xf0]  ;;  %v3103_v48 = vor.u32 %v3701_v28, %v3102_v37  ;;  %v3783_v51 = vld [vmem:[%s5568_s13 + $0x3cc] sm:$0xf]  ;;  %v3059_v62 = vor.u32 %v3687_v22, %v3056_v50 }
 0x453   :  { %2185 = vmatpush.bf16.msra.mxu2 %v3167_v59  ;;  %v3231_v53 = vor.u32 %v3733_v58, %v3230_v45  ;;  %v3086_v54 = vld [vmem:[%s5568_s13 + $0x108] sm:$0xf]  ;;  %v3697_v55 = vld [vmem:[%s5568_s13 + $0x114] sm:$0xf0]  ;;  %v3723_v59 = vld [vmem:[%s5568_s13 + $0x1ec] sm:$0xf]  ;;  %v3443_v14 = vor.u32 %v3783_v51, %v3440_v52 }
 0x454   :  { %2198 = vmatpush.bf16.msra.mxu3 %v3295_v60  ;;  %v3214_v56 = vld [vmem:[%s5568_s13 + $0x208] sm:$0xf]  ;;  %v3729_v57 = vld [vmem:[%s5568_s13 + $0x214] sm:$0xf0]  ;;  %v3200_v60 = vld [vmem:[%s5568_s13 + $0x1f8] sm:$0xf0]  ;;  %v3087_v2 = vor.u32 %v3697_v55, %v3086_v54 }
 0x455   :  { %2174 = vmatpush.bf16.msra.mxu1 %v3007_v63  ;;  %v3755_v63 = vld [vmem:[%s5568_s13 + $0x2ec] sm:$0xf]  ;;  %v3215_v7 = vor.u32 %v3729_v57, %v3214_v56  ;;  %v3024_v19 = vld [vmem:[%s5568_s13 + $0x98] sm:$0xf0] }
 0x456   :  { %2213 = vmatpush.bf16.msrb.mxu0 %v3391_v0  ;;  %2152 = vmatmul.bf16.vlgmr.msrb.gmra.mxu3 %v5101_v35  ;;  %v3328_v0 = vld [vmem:[%s5568_s13 + $0x2f8] sm:$0xf0]  ;;  %v3775_v61 = vld [vmem:[%s5568_s13 + $0x38c] sm:$0xf]  ;;  %v3027_v1 = vor.u32 %v3679_v17, %v3024_v19 }
 0x457   :  { %2186 = vmatpush.bf16.msra.mxu2 %v3151_v8  ;;  %v3203_v8 = vor.u32 %v3723_v59, %v3200_v60  ;;  %v3408_v23 = vld [vmem:[%s5568_s13 + $0x398] sm:$0xf0]  ;;  %v3715_v27 = vld [vmem:[%s5568_s13 + $0x1ac] sm:$0xf] }
 0x458   :  { %2199 = vmatpush.bf16.msra.mxu3 %v3279_v10  ;;  %v3331_v10 = vor.u32 %v3755_v63, %v3328_v0  ;;  %v3168_v29 = vld [vmem:[%s5568_s13 + $0x1b8] sm:$0xf0]  ;;  %v3675_v20 = vld [vmem:[%s5568_s13 + $0x6c] sm:$0xf] }
 0x459   :  { %2175 = vmatpush.bf16.msra.mxu1 %v2991_v13  ;;  %v3043_v13 = vor.u32 %v3683_v49, %v3040_v5  ;;  %v3296_v33 = vld [vmem:[%s5568_s13 + $0x2b8] sm:$0xf0]  ;;  %v3771_v36 = vld [vmem:[%s5568_s13 + $0x36c] sm:$0xf]  ;;  %v3171_v38 = vor.u32 %v3715_v27, %v3168_v29  ;;  %v3796_v29 = vld [vmem:[%s5570_s15 + $0x30] sm:$0xff] }
 0x45a   :  { %2214 = vmatpush.bf16.msrb.mxu0 %v3375_v18  ;;  %v3427_v18 = vor.u32 %v3779_v44, %v3424_v6  ;;  %v3008_v34 = vld [vmem:[%s5568_s13 + $0x78] sm:$0xf0]  ;;  %v3711_v21 = vld [vmem:[%s5568_s13 + $0x18c] sm:$0xf] }
 0x45b   :  { %2187 = vmatpush.bf16.msra.mxu2 %v3135_v24  ;;  %v3187_v24 = vor.u32 %v3719_v11, %v3184_v12  ;;  %v3392_v32 = vld [vmem:[%s5568_s13 + $0x378] sm:$0xf0]  ;;  %v3011_v25 = vor.u32 %v3675_v20, %v3008_v34  ;;  %v3743_v37 = vld [vmem:[%s5568_s13 + $0x28c] sm:$0xf] }
 0x45c   :  { %2200 = vmatpush.bf16.msra.mxu3 %v3263_v26  ;;  %v3315_v26 = vor.u32 %v3751_v15, %v3312_v16  ;;  %v3152_v42 = vld [vmem:[%s5568_s13 + $0x198] sm:$0xf0]  ;;  %v3767_v45 = vld [vmem:[%s5568_s13 + $0x34c] sm:$0xf] }
 0x45d   :  { %2176 = vmatpush.bf16.msra.mxu1 %v2975_v41  ;;  %v3411_v41 = vor.u32 %v3775_v61, %v3408_v23  ;;  %v3280_v28 = vld [vmem:[%s5568_s13 + $0x298] sm:$0xf0]  ;;  %v3707_v22 = vld [vmem:[%s5568_s13 + $0x16c] sm:$0xf] }
 0x45e   :  { %2215 = vmatpush.bf16.msrb.mxu0 %v3359_v31  ;;  %v3747_v31 = vld [vmem:[%s5568_s13 + $0x2ac] sm:$0xf]  ;;  %v3376_v58 = vld [vmem:[%s5568_s13 + $0x358] sm:$0xf0] }
 0x45f   :  { %2188 = vmatpush.bf16.msra.mxu2 %v3119_v39  ;;  %v3299_v39 = vor.u32 %v3747_v31, %v3296_v33  ;;  %v3379_v51 = vor.u32 %v3767_v45, %v3376_v58  ;;  %v3739_v52 = vld [vmem:[%s5568_s13 + $0x26c] sm:$0xf]  ;;  %v2976_v55 = vld [vmem:[%s5568_s13 + $0x38] sm:$0xf0]  ;;  %v3794_v33 = vld [vmem:[%s5570_s15 + $0x20] sm:$0xff] }
 0x460   :  { %2201 = vmatpush.bf16.msra.mxu3 %v3247_v43  ;;  %v3395_v43 = vor.u32 %v3771_v36, %v3392_v32  ;;  %v3667_v54 = vld [vmem:[%s5568_s13 + $0x2c] sm:$0xf]  ;;  %v3360_v57 = vld [vmem:[%s5568_s13 + $0x338] sm:$0xf0]  ;;  %v5501_v58 = vld [vmem:[%s5569_s14] sm:$0xf] }
 0x461   :  { %2177 = vmatpush.bf16.msra.mxu1 %v2959_v9  ;;  %v3671_v9 = vld [vmem:[%s5568_s13 + $0x4c] sm:$0xf]  ;;  %v2979_v63 = vor.u32 %v3667_v54, %v2976_v55  ;;  %v2960_v44 = vld [vmem:[%s5568_s13 + $0x18] sm:$0xf0]  ;;  %s2627_s14 = sshll.u32 %s5601_s6, 4  ;;  %s2628_s14 = int_to_ptr.hbm [resolvable:$true] %s2627_s14 }
 0x462   :  { %2216 = vmatpush.bf16.msrb.mxu0 %v3343_v46  ;;  %v2992_v46 = vld [vmem:[%s5568_s13 + $0x58] sm:$0xf0]  ;;  %v3763_v56 = vld [vmem:[%s5568_s13 + $0x32c] sm:$0xf] }
 0x463   :  { %2189 = vmatpush.bf16.msra.mxu2 %v3103_v48  ;;  %v3136_v48 = vld [vmem:[%s5568_s13 + $0x178] sm:$0xf0]  ;;  %v2995_v50 = vor.u32 %v3671_v9, %v2992_v46  ;;  %v3363_v0 = vor.u32 %v3763_v56, %v3360_v57  ;;  %v3735_v49 = vld [vmem:[%s5568_s13 + $0x24c] sm:$0xf]  ;;  %v3812_v9 = vld [vmem:[%s5570_s15 + $0xb0] sm:$0xff] }
 0x464   :  { %2202 = vmatpush.bf16.msra.mxu3 %v3231_v53  ;;  %2178 = vmatmul.bf16.vlgmr.msra.gmra.mxu1 %v4934_v3  ;;  %v3264_v53 = vld [vmem:[%s5568_s13 + $0x278] sm:$0xf0]  ;;  %v3139_v59 = vor.u32 %v3707_v22, %v3136_v48  ;;  %v3663_v5 = vld [vmem:[%s5568_s13 + $0xc] sm:$0xf]  ;;  %v1390_v22 = vperm.slane %v5501_v58, 0  ;;  %v3808_v57 = vld [vmem:[%s5570_s15 + $0x90] sm:$0xff] }
 0x465   :  { %2222 = vmatpush.bf16.msrb.mxu1 %v3075_v40  ;;  %2217 = vmatmul.bf16.vlgmr.msrb.gmra.mxu0 %v4950_v4  ;;  %v3155_v40 = vor.u32 %v3711_v21, %v3152_v42  ;;  %v3267_v60 = vor.u32 %v3739_v52, %v3264_v53  ;;  %v3759_v6 = vld [vmem:[%s5568_s13 + $0x30c] sm:$0xf]  ;;  %v3104_v12 = vld [vmem:[%s5568_s13 + $0x138] sm:$0xf0] }
 0x466   :  { %2261 = vmatpush.bf16.msra.mxu0 %v3459_v47  ;;  %v3283_v47 = vor.u32 %v3743_v37, %v3280_v28  ;;  %v3699_v11 = vld [vmem:[%s5568_s13 + $0x12c] sm:$0xf]  ;;  %v3232_v16 = vld [vmem:[%s5568_s13 + $0x238] sm:$0xf0]  ;;  %v3800_v28 = vld [vmem:[%s5570_s15 + $0x50] sm:$0xff] }
 0x467   :  { %2190 = vmatpush.bf16.msra.mxu2 %v3087_v2  ;;  %v3248_v2 = vld [vmem:[%s5568_s13 + $0x258] sm:$0xf0]  ;;  %v3731_v15 = vld [vmem:[%s5568_s13 + $0x22c] sm:$0xf]  ;;  %v3107_v19 = vor.u32 %v3699_v11, %v3104_v12 }
 0x468   :  { %2203 = vmatpush.bf16.msra.mxu3 %v3215_v7  ;;  %v3344_v7 = vld [vmem:[%s5568_s13 + $0x318] sm:$0xf0]  ;;  %v3235_v61 = vor.u32 %v3731_v15, %v3232_v16  ;;  %v3695_v23 = vld [vmem:[%s5568_s13 + $0x10c] sm:$0xf]  ;;  %v3818_v15 = vld [vmem:[%s5570_s15 + $0xe0] sm:$0xff] }
 0x469   :  { %2223 = vmatpush.bf16.msrb.mxu1 %v3059_v62  ;;  %v3703_v62 = vld [vmem:[%s5568_s13 + $0x14c] sm:$0xf]  ;;  %v3797_v17 = vld [vmem:[%s5570_s15 + $0x38] sm:$0xff] }
 0x46a   :  { %2262 = vmatpush.bf16.msra.mxu0 %v3443_v14  ;;  %2191 = vmatmul.bf16.vlgmr.msra.gmra.mxu2 %v4981_v30  ;;  %v3120_v14 = vld [vmem:[%s5568_s13 + $0x158] sm:$0xf0]  ;;  %v3795_v31 = vld [vmem:[%s5570_s15 + $0x28] sm:$0xff] }
 0x46b   :  { %2235 = vmatpush.bf16.msrb.mxu2 %v3203_v8  ;;  %2204 = vmatmul.bf16.vlgmr.msra.gmra.mxu3 %v5101_v35  ;;  %v3123_v8 = vor.u32 %v3703_v62, %v3120_v14  ;;  %v3216_v27 = vld [vmem:[%s5568_s13 + $0x218] sm:$0xf0]  ;;  %v3791_v20 = vld [vmem:[%s5570_s15 + $0x8] sm:$0xff] }
 0x46c   :  { %2248 = vmatpush.bf16.msrb.mxu3 %v3331_v10  ;;  %v3251_v10 = vor.u32 %v3735_v49, %v3248_v2  ;;  %v3803_v34 = vld [vmem:[%s5570_s15 + $0x68] sm:$0xff]  ;;  %v3801_v21 = vld [vmem:[%s5570_s15 + $0x58] sm:$0xff]  ;;  %v1391_v2 = vperm.slane %v5501_v58, 1 }
 0x46d   :  { %2224 = vmatpush.bf16.msrb.mxu1 %v3043_v13  ;;  %v2963_v13 = vor.u32 %v3663_v5, %v2960_v44  ;;  %v3813_v42 = vld [vmem:[%s5570_s15 + $0xb8] sm:$0xff]  ;;  %v3799_v46 = vld [vmem:[%s5570_s15 + $0x48] sm:$0xff]  ;;  %v3806_v5 = vld [vmem:[%s5570_s15 + $0x80] sm:$0xff] }
 0x46e   :  { %2263 = vmatpush.bf16.msra.mxu0 %v3427_v18  ;;  %v3347_v18 = vor.u32 %v3759_v6, %v3344_v7  ;;  %v3811_v45 = vld [vmem:[%s5570_s15 + $0xa8] sm:$0xff]  ;;  %v3809_v53 = vld [vmem:[%s5570_s15 + $0x98] sm:$0xff] }
 0x46f   :  { %2236 = vmatpush.bf16.msrb.mxu2 %v3187_v24  ;;  %v3088_v24 = vld [vmem:[%s5568_s13 + $0x118] sm:$0xf0]  ;;  %v3819_v12 = vld [vmem:[%s5570_s15 + $0xe8] sm:$0xff] }
 0x470   :  { %2249 = vmatpush.bf16.msrb.mxu3 %v3315_v26  ;;  %v3727_v26 = vld [vmem:[%s5568_s13 + $0x20c] sm:$0xf]  ;;  %v3821_v44 = vld [vmem:[%s5570_s15 + $0xf8] sm:$0xff] }
 0x471   :  { %2225 = vmatpush.bf16.msrb.mxu1 %v3027_v1  ;;  %v3091_v1 = vor.u32 %v3695_v23, %v3088_v24  ;;  %v3817_v24 = vld [vmem:[%s5570_s15 + $0xd8] sm:$0xff] }
 0x472   :  { %2264 = vmatpush.bf16.msra.mxu0 %v3411_v41  ;;  %v3219_v41 = vor.u32 %v3727_v26, %v3216_v27  ;;  %v1392_v27 = vperm.slane %v5501_v58, 2 }
 0x473   :  { %2237 = vmatpush.bf16.msrb.mxu2 %v3171_v38  ;;  %v3790_v38 = vld [vmem:[%s5570_s15] sm:$0xff] }
 0x474   :  { %2250 = vmatpush.bf16.msrb.mxu3 %v3299_v39  ;;  %v3802_v39 = vld [vmem:[%s5570_s15 + $0x60] sm:$0xff] }
 0x475   :  { %2226 = vmatpush.bf16.msrb.mxu1 %v3011_v25 }
 0x476   :  { %2265 = vmatpush.bf16.msra.mxu0 %v3395_v43 }
 0x477   :  { %2238 = vmatpush.bf16.msrb.mxu2 %v3155_v40 }
 0x478   :  { %2251 = vmatpush.bf16.msrb.mxu3 %v3283_v47 }
 0x479   :  { %2227 = vmatpush.bf16.msrb.mxu1 %v2995_v50  ;;  %v3798_v50 = vld [vmem:[%s5570_s15 + $0x40] sm:$0xff] }
 0x47a   :  { %2266 = vmatpush.bf16.msra.mxu0 %v3379_v51  ;;  %v3810_v51 = vld [vmem:[%s5570_s15 + $0xa0] sm:$0xff] }
 0x47b   :  { %2239 = vmatpush.bf16.msrb.mxu2 %v3139_v59 }
 0x47c   :  { %2252 = vmatpush.bf16.msrb.mxu3 %v3267_v60 }
 0x47d   :  { %2228 = vmatpush.bf16.msrb.mxu1 %v2979_v63  ;;  %v3807_v63 = vld [vmem:[%s5570_s15 + $0x88] sm:$0xff] }
 0x47e   :  { %2267 = vmatpush.bf16.msra.mxu0 %v3363_v0 }
 0x47f   :  { %2240 = vmatpush.bf16.msrb.mxu2 %v3123_v8 }
 0x480   :  { %2253 = vmatpush.bf16.msrb.mxu3 %v3251_v10  ;;  %v3820_v10 = vld [vmem:[%s5570_s15 + $0xf0] sm:$0xff] }
 0x481   :  { %2229 = vmatpush.bf16.msrb.mxu1 %v2963_v13 }
 0x482   :  { %2268 = vmatpush.bf16.msra.mxu0 %v3347_v18 }
 0x483   :  { %2241 = vmatpush.bf16.msrb.mxu2 %v3107_v19 }
 0x484   :  { %2254 = vmatpush.bf16.msrb.mxu3 %v3235_v61  ;;  %2230 = vmatmul.bf16.vlgmr.msrb.gmra.mxu1 %v4934_v3  ;;  %v3793_v3 = vld [vmem:[%s5570_s15 + $0x18] sm:$0xff] }
 0x485   :  { %2542 = vmatpush.bf16.msra.mxu1 %v3797_v17  ;;  %2269 = vmatmul.bf16.vlgmr.msra.gmra.mxu0 %v4950_v4  ;;  %v3805_v4 = vld [vmem:[%s5570_s15 + $0x78] sm:$0xff] }
 0x486   :  { %2581 = vmatpush.bf16.msrb.mxu0 %v3821_v44 }
 0x487   :  { %2242 = vmatpush.bf16.msrb.mxu2 %v3091_v1  ;;  %v3816_v1 = vld [vmem:[%s5570_s15 + $0xd0] sm:$0xff] }
 0x488   :  { %2255 = vmatpush.bf16.msrb.mxu3 %v3219_v41 }
 0x489   :  { %2543 = vmatpush.bf16.msra.mxu1 %v3796_v29 }
 0x48a   :  { %2243 = vmatmul.bf16.vlgmr.msrb.gmra.mxu2 %v4981_v30  ;;  %v3792_v30 = vld [vmem:[%s5570_s15 + $0x10] sm:$0xff]  ;;  %2582 = vmatpush.bf16.msrb.mxu0 %v3820_v10 }
 0x48b   :  { %2256 = vmatmul.bf16.vlgmr.msrb.gmra.mxu3 %v5101_v35  ;;  %2555 = vmatpush.bf16.msra.mxu2 %v3805_v4  ;;  %v3804_v35 = vld [vmem:[%s5570_s15 + $0x70] sm:$0xff] }
 0x48c   :  { %2568 = vmatpush.bf16.msra.mxu3 %v3813_v42 }
 0x48d   :  { %2544 = vmatpush.bf16.msra.mxu1 %v3795_v31 }
 0x48e   :  { %2583 = vmatpush.bf16.msrb.mxu0 %v3819_v12 }
 0x48f   :  { %2556 = vmatpush.bf16.msra.mxu2 %v3804_v35 }
 0x490   :  { %2569 = vmatpush.bf16.msra.mxu3 %v3812_v9 }
 0x491   :  { %2545 = vmatpush.bf16.msra.mxu1 %v3794_v33  ;;  %v3815_v33 = vld [vmem:[%s5570_s15 + $0xc8] sm:$0xff] }
 0x492   :  { %2584 = vmatpush.bf16.msrb.mxu0 %v3818_v15 }
 0x493   :  { %2557 = vmatpush.bf16.msra.mxu2 %v3803_v34 }
 0x494   :  { %2570 = vmatpush.bf16.msra.mxu3 %v3811_v45 }
 0x495   :  { %2546 = vmatpush.bf16.msra.mxu1 %v3793_v3 }
 0x496   :  { %2585 = vmatpush.bf16.msrb.mxu0 %v3817_v24 }
 0x497   :  { %2558 = vmatpush.bf16.msra.mxu2 %v3802_v39 }
 0x498   :  { %2571 = vmatpush.bf16.msra.mxu3 %v3810_v51 }
 0x499   :  { %2547 = vmatpush.bf16.msra.mxu1 %v3792_v30 }
 0x49a   :  { %2586 = vmatpush.bf16.msrb.mxu0 %v3816_v1 }
 0x49b   :  { %2559 = vmatpush.bf16.msra.mxu2 %v3801_v21 }
 0x49c   :  { %2572 = vmatpush.bf16.msra.mxu3 %v3809_v53 }
 0x49d   :  { %2548 = vmatpush.bf16.msra.mxu1 %v3791_v20  ;;  %v3814_v20 = vld [vmem:[%s5570_s15 + $0xc0] sm:$0xff] }
 0x49e   :  { %2587 = vmatpush.bf16.msrb.mxu0 %v3815_v33 }
 0x49f   :  { %2560 = vmatpush.bf16.msra.mxu2 %v3800_v28 }
 0x4a0   :  { %2573 = vmatpush.bf16.msra.mxu3 %v3808_v57 }
 0x4a1   :  { %2549 = vmatpush.bf16.msra.mxu1 %v3790_v38 }
 0x4a2   :  { %2588 = vmatpush.bf16.msrb.mxu0 %v3814_v20 }
 0x4a3   :  { %2561 = vmatpush.bf16.msra.mxu2 %v3799_v46 }
 0x4a4   :  { %2574 = vmatpush.bf16.msra.mxu3 %v3807_v63 }
 0x4a7   :  { %2562 = vmatpush.bf16.msra.mxu2 %v3798_v50 }
 0x4a8   :  { %2575 = vmatpush.bf16.msra.mxu3 %v3806_v5 }
 0x4ab   :  { %v2075_v36 = vpop.f32.mrf.mxu1 }
 0x4ac   :  { %v2114_v32 = vpop.f32.mrf.mxu0  ;;  %v2076_v52 = vadd.f32 %v2075_v36, %v1390_v22 }
 0x4b3   :  { %v2077_v25 = vpop.f32.mrf.mxu1 }
 0x4b4   :  { %v2116_v43 = vpop.f32.mrf.mxu0  ;;  %v1393_v25 = vperm.slane %v5501_v58, 3  ;;  %v3836_v58 = vld [vmem:[%s5571_s16] ss:$0 sm:$0xff]  ;;  %s4006_s16 = smov [#allocation8]  }
 0x4b5   :  { %s2625_s20 = sshll.u32 %s4006_s16, 4  ;;  %s2626_s20 = int_to_ptr.vmem [resolvable:$true] %s2625_s20 }
 0x4b7   :  { %v2088_v37 = vpop.f32.mrf.mxu2 }
 0x4b8   :  { %v2089_v54 = vadd.f32 %v2088_v37, %v2076_v52 }
 0x4bf   :  { %v2090_v48 = vpop.f32.mrf.mxu2 }
 0x4c1   :  { %v2127_v40 = vpop.f32.mrf.mxu1 }
 0x4c2   :  { %v2166_v47 = vpop.f32.mrf.mxu0  ;;  %v2128_v7 = vadd.f32 %v2127_v40, %v1391_v2 }
 0x4c9   :  { %v2129_v55 = vpop.f32.mrf.mxu1  ;;  %v2101_v59 = vpop.f32.mrf.mxu3 }
 0x4ca   :  { %v2168_v56 = vpop.f32.mrf.mxu0  ;;  %v2102_v60 = vadd.f32 %v2101_v59, %v2089_v54 }
 0x4cc   :  { %v2115_v62 = vadd.f32 %v2114_v32, %v2102_v60 }
 0x4cd   :  { %v2140_v14 = vpop.f32.mrf.mxu2 }
 0x4ce   :  { %v2274_v0 = vmax.f32 %v2115_v62, 0.0  ;;  %v2141_v11 = vadd.f32 %v2140_v14, %v2128_v7 }
 0x4d0   :  { %v2278_v49 = vpack.c.bf16 %v2274_v0, %v2274_v0 }
 0x4d1   :  { %v2103_v6 = vpop.f32.mrf.mxu3 }
 0x4d2   :  { %2550 = vmatmul.bf16.vlgmr.msra.gmra.mxu1 %v2278_v49 }
 0x4d5   :  { %v2142_v8 = vpop.f32.mrf.mxu2 }
 0x4d9   :  { %v2153_v13 = vpop.f32.mrf.mxu3 }
 0x4da   :  { %v2154_v18 = vadd.f32 %v2153_v13, %v2141_v11 }
 0x4dc   :  { %v2167_v16 = vadd.f32 %v2166_v47, %v2154_v18 }
 0x4de   :  { %v2275_v61 = vmax.f32 %v2167_v16, 0.0 }
 0x4e0   :  { %v2279_v23 = vpack.c.bf16 %v2275_v61, %v2275_v61 }
 0x4e1   :  { %v2179_v17 = vpop.f32.mrf.mxu1  ;;  %v2155_v26 = vpop.f32.mrf.mxu3 }
 0x4e2   :  { %v2218_v19 = vpop.f32.mrf.mxu0  ;;  %2563 = vmatmul.bf16.vlgmr.msra.gmra.mxu2 %v2279_v23  ;;  %v2180_v31 = vadd.f32 %v2179_v17, %v1392_v27 }
 0x4e9   :  { %v2181_v29 = vpop.f32.mrf.mxu1 }
 0x4ea   :  { %v2220_v41 = vpop.f32.mrf.mxu0 }
 0x4ed   :  { %v2192_v3 = vpop.f32.mrf.mxu2 }
 0x4ee   :  { %v2205_v4 = vpop.f32.mrf.mxu3  ;;  %v2193_v30 = vadd.f32 %v2192_v3, %v2180_v31 }
 0x4f0   :  { %v2206_v35 = vadd.f32 %v2205_v4, %v2193_v30 }
 0x4f2   :  { %v2219_v34 = vadd.f32 %v2218_v19, %v2206_v35 }
 0x4f4   :  { %v2276_v36 = vmax.f32 %v2219_v34, 0.0 }
 0x4f5   :  { %v2194_v32 = vpop.f32.mrf.mxu2 }
 0x4f6   :  { %v2207_v38 = vpop.f32.mrf.mxu3  ;;  %v2280_v39 = vpack.c.bf16 %v2276_v36, %v2276_v36 }
 0x4f8   :  { %2576 = vmatmul.bf16.vlgmr.msra.gmra.mxu3 %v2280_v39 }
 0x501   :  { %v2231_v21 = vpop.f32.mrf.mxu1 }
 0x502   :  { %v2270_v42 = vpop.f32.mrf.mxu0  ;;  %v2232_v28 = vadd.f32 %v2231_v21, %v1393_v25 }
 0x509   :  { %v2233_v43 = vpop.f32.mrf.mxu1 }
 0x50a   :  { %v2272_v37 = vpop.f32.mrf.mxu0 }
 0x50d   :  { %v2244_v9 = vpop.f32.mrf.mxu2 }
 0x50e   :  { %v2245_v46 = vadd.f32 %v2244_v9, %v2232_v28  ;;  %v2257_v45 = vpop.f32.mrf.mxu3 }
 0x510   :  { %v2258_v40 = vadd.f32 %v2257_v45, %v2245_v46 }
 0x512   :  { %v2271_v47 = vadd.f32 %v2270_v42, %v2258_v40 }
 0x514   :  { %v2277_v22 = vmax.f32 %v2271_v47, 0.0 }
 0x515   :  { %v2246_v48 = vpop.f32.mrf.mxu2 }
 0x516   :  { %v2281_v50 = vpack.c.bf16 %v2277_v22, %v2277_v22  ;;  %v2259_v51 = vpop.f32.mrf.mxu3 }
 0x518   :  { %2589 = vmatmul.bf16.vlgmr.msrb.gmra.mxu0 %v2281_v50 }
 0x54f   :  { %v2551_v52 = vpop.f32.mrf.mxu1 }
 0x550   :  { %v2552_v59 = vadd.f32 %v3836_v58, %v2551_v52 }
 0x557   :  { %v2553_v53 = vpop.f32.mrf.mxu1 }
 0x565   :  { %v2564_v54 = vpop.f32.mrf.mxu2 }
 0x566   :  { %v2565_v60 = vadd.f32 %v2564_v54, %v2552_v59 }
 0x56d   :  { %v2566_v55 = vpop.f32.mrf.mxu2 }
 0x57b   :  { %v2577_v56 = vpop.f32.mrf.mxu3 }
 0x57c   :  { %v2578_v62 = vadd.f32 %v2577_v56, %v2565_v60 }
 0x583   :  { %v2579_v57 = vpop.f32.mrf.mxu3 }
 0x595   :  { %v2590_v14 = vpop.f32.mrf.mxu0 }
 0x596   :  { %v2591_v63 = vadd.f32 %v2590_v14, %v2578_v62 }
 0x598   :  { %v2595_v0 = vsel %vm2594_vm8, %v2591_v63, -inf }
 0x599   :  { %2596 = vmax.xlane.f32.xlu2 %v2595_v0 }
 0x59d   :  { %v2592_v49 = vpop.f32.mrf.mxu0 }
 0x60c   :  { %v2597_v2 = vpop.xlane.xlu2 %2596 }
 0x60d   :  { %v2598_v5 = vsub.f32 %v2591_v63, %v2597_v2 }
 0x60f   :  { %v2599_v44 = vmul.f32 1.442695, %v2598_v5 }
 0x611   :  { %3893 = vpow2.f32 %v2599_v44 }
 0x617   :  { %v3894_v6 = vpop.eup %3893 }
 0x618   :  { %v2601_v7 = vsel %vm2594_vm8, %v3894_v6, 0.0 }
 0x619   :  { %2602 = vadd.xlane.f32.xlu2 %v2601_v7 }
 0x68c   :  { %v2603_v8 = vpop.xlane.xlu2 %2602 }
 0x68d   :  { %3895 = vrcp.f32 %v2603_v8  ;;  %v2615_v13 = vand.u32 2147483648, %v2603_v8  ;;  %v2613_v15 = vand.u32 2147483647, %v2603_v8  ;;  %vm2609_vm4 = vweird.f32 %v2603_v8 }
 0x68f   :  { %v2616_v17 = vor.u32 1.1754944e-38, %v2615_v13  ;;  %vm2614_vm6 = vcmp.eq.f32.partialorder %v2613_v15, 8.507059e+37 }
 0x693   :  { %v3896_v10 = vpop.eup %3895 }
 0x694   :  { %v2605_v11 = vmul.f32 %v3896_v10, %v2603_v8  ;;  %vm2610_vm3 = vweird.f32 %v3896_v10 }
 0x695   :  { %vm2611_vm5 = vmor %vm2609_vm4, %vm2610_vm3 }
 0x696   :  { %v2606_v12 = vsub.f32 1.0, %v2605_v11 }
 0x698   :  { %v2607_v18 = vmul.f32 %v3896_v10, %v2606_v12 }
 0x69a   :  { %v2608_v16 = vadd.f32 %v3896_v10, %v2607_v18 }
 0x69c   :  { %v2612_v19 = vsel %vm2611_vm5, %v3896_v10, %v2608_v16 }
 0x69d   :  { %v2617_v61 = vsel %vm2614_vm6, %v2616_v17, %v2612_v19 }
 0x69e   :  { %v2618_v23 = vmul.f32 %v3894_v6, %v2617_v61 }
 0x6a0   :  { %2619 = vst [vmem:[#allocation8] sm:$0x3] %v2618_v23 }
 0x6a1   :  { %2630 = dma.vmem_to_hbm [thread:$0]  %s2626_s20, 32, %s2628_s14, [#allocation4]  }
 0x6a2   :  { %3997 = dma.done.wait [#allocation4], 32  }
 0x6a3   :  { %3998 = vsyncadd [#allocation4], 4294967264 }
 0x6a4   :  { %2635 = vsyncpa [#allocation3], 1 }
 0x6a5   :  { %2636 = vsyncpa [#allocation6], 1 }
 0x6a6   :  { %2637 = vsyncpa [#allocation4], 1 }

</bundles_post_ra>
